<compile_context>
chip_gen: v7x
topology: tpu7x:2x2x1
jax: 0.10.0
libtpu: 0.0.40
codegen_flags: <defaults>
</compile_context>

<pallas_src>
import functools

import jax
import jax.numpy as jnp
from jax.experimental import pallas as pl
from jax.experimental.pallas import tpu as pltpu

STATE_DIM = 16
ACTION_DIM = 4
HIDDEN1 = 400
HIDDEN2 = 300
MAX_ACTION = 2.0

# Lane-aligned (multiple-of-128) padded sizes.
H1_PAD = 512
H2_PAD = 384
ACT_PAD = 128

MIN_TILE = 128   # sublane/lane friendly minimum batch tile
MAX_TILE = 512   # sweep winner: amortizes per-step overhead, tiny VMEM footprint


def _round_up(x, m):
    return (x + m - 1) // m * m


def _choose_batch_tile(batch):
    """Pick the batch tile: big enough to amortize per-grid-step overhead,
    but keep >= 2 tiles when the batch allows so v7x can shard the 'parallel'
    axis across both TensorCores. Capped at MAX_TILE (VMEM use stays < 4 MiB)."""
    b128 = _round_up(max(batch, 1), MIN_TILE)
    if b128 <= MIN_TILE:
        return MIN_TILE
    half = (b128 // 2) // MIN_TILE * MIN_TILE
    return max(MIN_TILE, min(MAX_TILE, half))


def actor_kernel(x_ref, w1_ref, b1_ref, w2_ref, b2_ref, w3_ref, b3_ref, o_ref,
                 *, max_action):
    # Layer 1: relu(x @ W1 + b1) -- bf16 MXU operands, f32 accumulate,
    # f32 bias/ReLU, then downcast fused into the epilogue.
    x = x_ref[...].astype(jnp.bfloat16)
    h1 = jnp.dot(x, w1_ref[...], preferred_element_type=jnp.float32) + b1_ref[...]
    h1 = jnp.maximum(h1, 0.0).astype(jnp.bfloat16)
    # Layer 2: relu(h1 @ W2 + b2)
    h2 = jnp.dot(h1, w2_ref[...], preferred_element_type=jnp.float32) + b2_ref[...]
    h2 = jnp.maximum(h2, 0.0).astype(jnp.bfloat16)
    # Layer 3: max_action * tanh(h2 @ W3 + b3) -- tanh/scale in f32, store bf16.
    h3 = jnp.dot(h2, w3_ref[...], preferred_element_type=jnp.float32) + b3_ref[...]
    o_ref[...] = (max_action * jnp.tanh(h3)).astype(o_ref.dtype)


def actor_forward(state, padded_params, max_action):
    """state: (batch, STATE_DIM) f32. padded_params from prepare_params().
    Returns (batch, ACTION_DIM) f32."""
    w1, b1, w2, b2, w3, b3 = padded_params
    batch = state.shape[0]
    tile = _choose_batch_tile(batch)
    padded_batch = _round_up(max(batch, 1), tile)
    if padded_batch != batch:
        state = jnp.pad(state, ((0, padded_batch - batch), (0, 0)))
    n_tiles = padded_batch // tile

    def resident(arr):
        # Whole (small) weight/bias array: constant index map keeps it VMEM
        # resident across grid steps; single-buffered since it never re-DMAs.
        return pl.BlockSpec(arr.shape, lambda i: (0, 0),
                            pipeline_mode=pl.Buffered(1))

    kernel = functools.partial(actor_kernel, max_action=float(max_action))
    out = pl.pallas_call(
        kernel,
        out_shape=jax.ShapeDtypeStruct((padded_batch, ACT_PAD), jnp.bfloat16),
        grid=(n_tiles,),
        in_specs=[
            pl.BlockSpec((tile, STATE_DIM), lambda i: (i, 0)),
            resident(w1), resident(b1),
            resident(w2), resident(b2),
            resident(w3), resident(b3),
        ],
        out_specs=pl.BlockSpec((tile, ACT_PAD), lambda i: (i, 0)),
        compiler_params=pltpu.CompilerParams(
            dimension_semantics=("parallel",)),
    )(state, w1, b1, w2, b2, w3, b3)
    return out[:batch, :ACTION_DIM].astype(jnp.float32)


def init_linear_params(key, fan_in, fan_out):
    # Mimic PyTorch nn.Linear default init: U(-1/sqrt(fan_in), 1/sqrt(fan_in)).
    kw, kb = jax.random.split(key)
    bound = 1.0 / jnp.sqrt(fan_in)
    # Stored transposed vs. PyTorch: (in_features, out_features) so y = x @ W + b.
    w = jax.random.uniform(kw, (fan_in, fan_out), jnp.float32, -bound, bound)
    b = jax.random.uniform(kb, (1, fan_out), jnp.float32, -bound, bound)
    return w, b


def prepare_params(params):
    """Zero-pad to lane-aligned shapes and cast weights to bf16 (done once)."""
    w1, b1, w2, b2, w3, b3 = params

    def pad2(a, rows, cols):
        return jnp.pad(a, ((0, rows - a.shape[0]), (0, cols - a.shape[1])))

    w1p = pad2(w1, STATE_DIM, H1_PAD).astype(jnp.bfloat16)
    b1p = pad2(b1, 1, H1_PAD)                     # f32, zeros on padded lanes
    w2p = pad2(w2, H1_PAD, H2_PAD).astype(jnp.bfloat16)
    b2p = pad2(b2, 1, H2_PAD)
    w3p = pad2(w3, H2_PAD, ACT_PAD).astype(jnp.bfloat16)
    b3p = pad2(b3, 1, ACT_PAD)
    return w1p, b1p, w2p, b2p, w3p, b3p


def ref_forward_bf16(state, padded_params, max_action):
    # Pure-JAX reference using the same bf16-operand / f32-accumulate /
    # bf16-intermediate / bf16-output recipe as the kernel.
    w1, b1, w2, b2, w3, b3 = padded_params
    h1 = jnp.maximum(jnp.dot(state.astype(jnp.bfloat16), w1,
                             preferred_element_type=jnp.float32) + b1, 0.0)
    h1 = h1.astype(jnp.bfloat16)
    h2 = jnp.maximum(jnp.dot(h1, w2, preferred_element_type=jnp.float32) + b2, 0.0)
    h2 = h2.astype(jnp.bfloat16)
    h3 = jnp.dot(h2, w3, preferred_element_type=jnp.float32) + b3
    out = (max_action * jnp.tanh(h3)).astype(jnp.bfloat16)
    return out[:, :ACTION_DIM].astype(jnp.float32)


def ref_forward_f32(state, params, max_action):
    # PyTorch-semantics full-f32 reference.
    w1, b1, w2, b2, w3, b3 = params
    h1 = jnp.maximum(state @ w1 + b1, 0.0)
    h2 = jnp.maximum(h1 @ w2 + b2, 0.0)
    return max_action * jnp.tanh(h2 @ w3 + b3)


if __name__ == "__main__":
    key = jax.random.PRNGKey(0)
    k_x, k_x2, k1, k2, k3 = jax.random.split(key, 5)

    w1, b1 = init_linear_params(k1, STATE_DIM, HIDDEN1)
    w2, b2 = init_linear_params(k2, HIDDEN1, HIDDEN2)
    w3, b3 = init_linear_params(k3, HIDDEN2, ACTION_DIM)
    params = (w1, b1, w2, b2, w3, b3)
    padded_params = prepare_params(params)

    # Small demo batch (single 128-row tile).
    batch = 8
    state = jax.random.normal(k_x, (batch, STATE_DIM), jnp.float32)
    out = jax.block_until_ready(actor_forward(state, padded_params, MAX_ACTION))
    assert out.shape == (batch, ACTION_DIM)

    # Tight-ish check vs. a bf16-matched pure-JAX reference (bf16 output ulp ~8e-3
    # near |max_action|, plus MXU-vs-XLA accumulation-order differences).
    ref_bf16 = ref_forward_bf16(state, padded_params, MAX_ACTION)
    assert jnp.allclose(out, ref_bf16, atol=2e-2, rtol=2e-2)

    # Loose check vs. the full-f32 PyTorch-semantics reference.
    ref_f32 = ref_forward_f32(state, params, MAX_ACTION)
    assert jnp.allclose(out, ref_f32, atol=8e-2, rtol=8e-2)

    # Larger, non-multiple batch: exercises the 512-row tile / 2-tile grid path
    # (parallel axis shardable across v7x's two TensorCores) and row padding.
    batch2 = 1000
    state2 = jax.random.normal(k_x2, (batch2, STATE_DIM), jnp.float32)
    out2 = jax.block_until_ready(actor_forward(state2, padded_params, MAX_ACTION))
    assert out2.shape == (batch2, ACTION_DIM)
    ref2_bf16 = ref_forward_bf16(state2, padded_params, MAX_ACTION)
    assert jnp.allclose(out2, ref2_bf16, atol=2e-2, rtol=2e-2)
    ref2_f32 = ref_forward_f32(state2, params, MAX_ACTION)
    assert jnp.allclose(out2, ref2_f32, atol=8e-2, rtol=8e-2)

    print("KERNEL_OK")
</pallas_src>

<mosaic_0001>
module attributes {stable_mosaic.version = 11 : i64} {
  func.func @actor_kernel(%arg0: i32, %arg1: memref<128x16xf32, #tpu.memory_space<vmem>>, %arg2: memref<16x512xbf16, #tpu.memory_space<vmem>>, %arg3: memref<1x512xf32, #tpu.memory_space<vmem>>, %arg4: memref<512x384xbf16, #tpu.memory_space<vmem>>, %arg5: memref<1x384xf32, #tpu.memory_space<vmem>>, %arg6: memref<384x128xbf16, #tpu.memory_space<vmem>>, %arg7: memref<1x128xf32, #tpu.memory_space<vmem>>, %arg8: memref<128x128xbf16, #tpu.memory_space<vmem>>) attributes {dimension_semantics = [#tpu.dimension_semantics<parallel>], iteration_bounds = array<i64: 1>, scalar_prefetch = 0 : i64, scratch_operands = 0 : i64, tpu.core_type = #tpu.core_type<tc>, window_params = [{transform_indices = @transform_0, window_bounds = array<i64: 128, 16>}, {pipeline_mode = #tpu.pipeline_mode<synchronous>, transform_indices = @transform_1, window_bounds = array<i64: 16, 512>}, {pipeline_mode = #tpu.pipeline_mode<synchronous>, transform_indices = @transform_2, window_bounds = array<i64: 1, 512>}, {pipeline_mode = #tpu.pipeline_mode<synchronous>, transform_indices = @transform_3, window_bounds = array<i64: 512, 384>}, {pipeline_mode = #tpu.pipeline_mode<synchronous>, transform_indices = @transform_4, window_bounds = array<i64: 1, 384>}, {pipeline_mode = #tpu.pipeline_mode<synchronous>, transform_indices = @transform_5, window_bounds = array<i64: 384, 128>}, {pipeline_mode = #tpu.pipeline_mode<synchronous>, transform_indices = @transform_6, window_bounds = array<i64: 1, 128>}, {transform_indices = @transform_7, window_bounds = array<i64: 128, 128>}]} {
    %c0 = arith.constant 0 : index
    %c0_0 = arith.constant 0 : index
    %0 = vector.load %arg1[%c0, %c0_0] : memref<128x16xf32, #tpu.memory_space<vmem>>, vector<128x16xf32>
    %1 = arith.truncf %0 : vector<128x16xf32> to vector<128x16xbf16>
    %c0_1 = arith.constant 0 : index
    %c0_2 = arith.constant 0 : index
    %2 = vector.load %arg2[%c0_1, %c0_2] : memref<16x512xbf16, #tpu.memory_space<vmem>>, vector<16x512xbf16>
    %cst = arith.constant dense<0.000000e+00> : vector<128x512xf32>
    %3 = tpu.matmul %1, %2, %cst {dimension_numbers = #tpu.dot_dimension_numbers<[1], [0], [0], [1], [0, 0, 1, 1], [], []>} : vector<128x16xbf16>, vector<16x512xbf16>, vector<128x512xf32> -> vector<128x512xf32>
    %c0_3 = arith.constant 0 : index
    %c0_4 = arith.constant 0 : index
    %4 = vector.load %arg3[%c0_3, %c0_4] : memref<1x512xf32, #tpu.memory_space<vmem>>, vector<1x512xf32>
    %5 = vector.broadcast %4 : vector<1x512xf32> to vector<128x512xf32>
    %6 = arith.addf %3, %5 : vector<128x512xf32>
    %cst_5 = arith.constant 0.000000e+00 : f32
    %7 = vector.broadcast %cst_5 : f32 to vector<128x512xf32>
    %8 = arith.maximumf %6, %7 : vector<128x512xf32>
    %9 = arith.truncf %8 : vector<128x512xf32> to vector<128x512xbf16>
    %c0_6 = arith.constant 0 : index
    %c0_7 = arith.constant 0 : index
    %10 = vector.load %arg4[%c0_6, %c0_7] : memref<512x384xbf16, #tpu.memory_space<vmem>>, vector<512x384xbf16>
    %cst_8 = arith.constant dense<0.000000e+00> : vector<128x384xf32>
    %11 = tpu.matmul %9, %10, %cst_8 {dimension_numbers = #tpu.dot_dimension_numbers<[1], [0], [0], [1], [0, 0, 1, 1], [], []>} : vector<128x512xbf16>, vector<512x384xbf16>, vector<128x384xf32> -> vector<128x384xf32>
    %c0_9 = arith.constant 0 : index
    %c0_10 = arith.constant 0 : index
    %12 = vector.load %arg5[%c0_9, %c0_10] : memref<1x384xf32, #tpu.memory_space<vmem>>, vector<1x384xf32>
    %13 = vector.broadcast %12 : vector<1x384xf32> to vector<128x384xf32>
    %14 = arith.addf %11, %13 : vector<128x384xf32>
    %cst_11 = arith.constant 0.000000e+00 : f32
    %15 = vector.broadcast %cst_11 : f32 to vector<128x384xf32>
    %16 = arith.maximumf %14, %15 : vector<128x384xf32>
    %17 = arith.truncf %16 : vector<128x384xf32> to vector<128x384xbf16>
    %c0_12 = arith.constant 0 : index
    %c0_13 = arith.constant 0 : index
    %18 = vector.load %arg6[%c0_12, %c0_13] : memref<384x128xbf16, #tpu.memory_space<vmem>>, vector<384x128xbf16>
    %cst_14 = arith.constant dense<0.000000e+00> : vector<128x128xf32>
    %19 = tpu.matmul %17, %18, %cst_14 {dimension_numbers = #tpu.dot_dimension_numbers<[1], [0], [0], [1], [0, 0, 1, 1], [], []>} : vector<128x384xbf16>, vector<384x128xbf16>, vector<128x128xf32> -> vector<128x128xf32>
    %c0_15 = arith.constant 0 : index
    %c0_16 = arith.constant 0 : index
    %20 = vector.load %arg7[%c0_15, %c0_16] : memref<1x128xf32, #tpu.memory_space<vmem>>, vector<1x128xf32>
    %21 = vector.broadcast %20 : vector<1x128xf32> to vector<128x128xf32>
    %22 = arith.addf %19, %21 : vector<128x128xf32>
    %23 = math.tanh %22 : vector<128x128xf32>
    %cst_17 = arith.constant 2.000000e+00 : f32
    %24 = vector.broadcast %cst_17 : f32 to vector<128x128xf32>
    %25 = arith.mulf %24, %23 : vector<128x128xf32>
    %26 = arith.truncf %25 : vector<128x128xf32> to vector<128x128xbf16>
    %c0_18 = arith.constant 0 : index
    %c0_19 = arith.constant 0 : index
    %27 = vector.load %arg8[%c0_18, %c0_19] : memref<128x128xbf16, #tpu.memory_space<vmem>>, vector<128x128xbf16>
    tpu.vector_store %arg8[%c0_18, %c0_19], %26 {strides = array<i32>} : memref<128x128xbf16, #tpu.memory_space<vmem>>, vector<128x128xbf16>,
    return
  }
  func.func @transform_0(%arg0: i32) -> (i32, i32) {
    %c0_i32 = arith.constant 0 : i32
    %c0_i32_0 = arith.constant 0 : i32
    return %arg0, %c0_i32 : i32, i32
  }
  func.func @transform_1(%arg0: i32) -> (i32, i32) {
    %c0_i32 = arith.constant 0 : i32
    %c0_i32_0 = arith.constant 0 : i32
    %c0_i32_1 = arith.constant 0 : i32
    return %c0_i32, %c0_i32_0 : i32, i32
  }
  func.func @transform_2(%arg0: i32) -> (i32, i32) {
    %c0_i32 = arith.constant 0 : i32
    %c0_i32_0 = arith.constant 0 : i32
    %c0_i32_1 = arith.constant 0 : i32
    return %c0_i32, %c0_i32_0 : i32, i32
  }
  func.func @transform_3(%arg0: i32) -> (i32, i32) {
    %c0_i32 = arith.constant 0 : i32
    %c0_i32_0 = arith.constant 0 : i32
    %c0_i32_1 = arith.constant 0 : i32
    return %c0_i32, %c0_i32_0 : i32, i32
  }
  func.func @transform_4(%arg0: i32) -> (i32, i32) {
    %c0_i32 = arith.constant 0 : i32
    %c0_i32_0 = arith.constant 0 : i32
    %c0_i32_1 = arith.constant 0 : i32
    return %c0_i32, %c0_i32_0 : i32, i32
  }
  func.func @transform_5(%arg0: i32) -> (i32, i32) {
    %c0_i32 = arith.constant 0 : i32
    %c0_i32_0 = arith.constant 0 : i32
    %c0_i32_1 = arith.constant 0 : i32
    return %c0_i32, %c0_i32_0 : i32, i32
  }
  func.func @transform_6(%arg0: i32) -> (i32, i32) {
    %c0_i32 = arith.constant 0 : i32
    %c0_i32_0 = arith.constant 0 : i32
    %c0_i32_1 = arith.constant 0 : i32
    return %c0_i32, %c0_i32_0 : i32, i32
  }
  func.func @transform_7(%arg0: i32) -> (i32, i32) {
    %c0_i32 = arith.constant 0 : i32
    %c0_i32_0 = arith.constant 0 : i32
    return %arg0, %c0_i32 : i32, i32
  }
}

</mosaic_0001>

<bundles_post_ra>
// kernel: tpu_custom_call.1
= control target key start
LH: loop header
LB: loop body
LE: loop exit
PB: predicated region body
PF: predicated region fallthrough
CT: control target
= control target key end

     0   :  { %12 = vsyncpa [#allocation3], 0  ;;  %s3386_s0 = inlined_call_operand.vmem [shape: f32[128,16], index: 0, kind: input, shape index: {}]   ;;  %s3387_s1 = inlined_call_operand.vmem [shape: bf16[16,512], index: 1, kind: input, shape index: {}]   ;;  %s3388_s2 = inlined_call_operand.vmem [shape: f32[1,512], index: 2, kind: input, shape index: {}]   ;;  %s3389_s3 = inlined_call_operand.hbm [shape: bf16[512,384], index: 3, kind: input, shape index: {}]   ;;  %s3390_s4 = inlined_call_operand.vmem [shape: f32[1,384], index: 4, kind: input, shape index: {}]   ;;  %s3391_s5 = inlined_call_operand.hbm [shape: bf16[384,128], index: 5, kind: input, shape index: {}]   ;;  %s3392_s6 = inlined_call_operand.vmem [shape: f32[1,128], index: 6, kind: input, shape index: {}]   ;;  %s3393_s7 = inlined_call_operand.hbm [shape: bf16[128,128], index: 7, kind: output, shape index: {}]  }
   0x1   :  { %13 = vsyncpa [#allocation6], 0 }
   0x2   :  { %14 = vsyncpa [#allocation4], 0  ;;  %s2939_s24 = smov [#allocation2]   ;;  %s2867_s28 = scalar_lea.hbm %s3389_s3, 12288 }
   0x3   :  { %s26_s25 = sshll.u32 %s2939_s24, 4  ;;  %p2868_p0 = scmp.ne.s32.totalorder %s3389_s3, %s2867_s28  ;;  %s27_s25 = int_to_ptr.vmem [resolvable:$true] %s26_s25 }
   0x4   :  { %p2871_p1 = scmp.lt.u32.totalorder %s2867_s28, %s3389_s3 }
   0x6   :  { %p2873_p2 = pnand %p2871_p1, %p2868_p0 }
   0x8   :  { %2876 = shalt.err (!%p2873_p2)
}
   0x9   :  { %s2877_s10 = scalar_lea.vmem %s27_s25, 12288  ;;  %p2882_p4 = scmp.lt.s32.totalorder %s27_s25, %s27_s25 }
   0xa   :  { %p2878_p3 = scmp.ne.s32.totalorder %s27_s25, %s2877_s10  ;;  %p2883_p5 = scmp.lt.s32.totalorder %s2877_s10, %s2877_s10 }
   0xc   :  { %p2884_p6 = por %p2883_p5, %p2882_p4 }
   0xe   :  { %p2885_p7 = pnand %p2884_p6, %p2878_p3 }
  0x10   :  { %2888 = shalt.err (!%p2885_p7)
}
  0x11   :  { %s2940_s11 = smov 192   ;;  %s2941_s12 = smov 12  }
  0x12   :  { %32 = dma.hbm_to_vmem [thread:$0]  %s3389_s3, 12288, %s27_s25, [#allocation3], %s2940_s11, %s2940_s11, %s2941_s12  }
  0x13   :  { %s2942_s15 = smov [#allocation5]   ;;  %s2889_s19 = scalar_lea.hbm %s3391_s5, 3072 }
  0x14   :  { %s40_s16 = sshll.u32 %s2942_s15, 4  ;;  %p2890_p8 = scmp.ne.s32.totalorder %s3391_s5, %s2889_s19  ;;  %s41_s16 = int_to_ptr.vmem [resolvable:$true] %s40_s16 }
  0x15   :  { %p2893_p9 = scmp.lt.u32.totalorder %s2889_s19, %s3391_s5 }
  0x17   :  { %p2895_p10 = pnand %p2893_p9, %p2890_p8 }
  0x19   :  { %2898 = shalt.err (!%p2895_p10)
}
  0x1a   :  { %s2899_s24 = scalar_lea.vmem %s41_s16, 3072  ;;  %p2904_p12 = scmp.lt.s32.totalorder %s41_s16, %s41_s16 }
  0x1b   :  { %p2900_p11 = scmp.ne.s32.totalorder %s41_s16, %s2899_s24  ;;  %p2905_p13 = scmp.lt.s32.totalorder %s2899_s24, %s2899_s24 }
  0x1d   :  { %p2906_p0 = por %p2905_p13, %p2904_p12 }
  0x1f   :  { %p2907_p1 = pnand %p2906_p0, %p2900_p11 }
  0x21   :  { %2910 = shalt.err (!%p2907_p1)
}
  0x22   :  { %s2943_s3 = smov 64   ;;  %s2944_s25 = smov 4  }
  0x23   :  { %46 = dma.hbm_to_vmem [thread:$0]  %s3391_s5, 3072, %s41_s16, [#allocation6], %s2943_s3, %s2943_s3, %s2944_s25  }
  0x24   :  { %2933 = dma.done.wait [#allocation3], 12288  }
  0x25   :  { %2934 = vsyncadd [#allocation3], 4294955008 }
  0x26   :  { %2935 = dma.done.wait [#allocation6], 3072  }
  0x27   :  { %2936 = vsyncadd [#allocation6], 4294964224  ;;  %v2945_v0 = vmov 0   ;;  %v2677_v1 = vld [vmem:[%s3387_s1 + $0x4] ss:$16 sps:$4 sm:$0xff]   ;;  %v57_v4 = vld [vmem:[%s3386_s0 + $0x8] sm:$0xff] }
  0x28   :  { %183 = vmatprep.mubr.bf16.mxu0 %v2945_v0  ;;  %296 = vmatprep.mubr.bf16.mxu1 %v2945_v0  ;;  %v2679_v2 = vld [vmem:[%s3387_s1] ss:$16 sps:$4 sm:$0xff]   ;;  %vm126_vm0 = vcmask 130048   ;;  %v59_v7 = vld [vmem:[%s3386_s0 + $0x18] sm:$0xff]  ;;  %v2686_v13 = vld [vmem:[#allocation2 + $0xc8] ss:$12 sps:$4 sm:$0xff]  }
  0x29   :  { %v56_v3 = vld [vmem:[%s3386_s0] sm:$0xff]  ;;  %151 = vmatprep.subr.bf16.mxu0 %v2677_v1  ;;  %v58_v6 = vld [vmem:[%s3386_s0 + $0x10] sm:$0xff]  ;;  %v2680_v8 = vld [vmem:[%s3387_s1 + $0xc] ss:$16 sps:$4 sm:$0xff]  }
  0x2a   :  { %v72_v5 = vpack.c.bf16 %v57_v4, %v56_v3  ;;  %152 = vmatpush1.bf16.msra.mxu0 %v2679_v2  ;;  %v2682_v9 = vld [vmem:[%s3387_s1 + $0x8] ss:$16 sps:$4 sm:$0xff]   ;;  %v2683_v10 = vld [vmem:[#allocation2] ss:$12 sps:$4 sm:$0xff]   ;;  %264 = vmatprep.subr.bf16.mxu1 %v2680_v8  ;;  %v2685_v11 = vld [vmem:[#allocation2 + $0x4] ss:$12 sps:$4 sm:$0xff]   ;;  %v73_v12 = vpack.c.bf16 %v59_v7, %v58_v6 }
  0x2b   :  { %265 = vmatpush1.bf16.msra.mxu1 %v2682_v9  ;;  %1130 = vmatprep.subr.bf16.mxu0 %v2685_v11  ;;  %v2687_v14 = vld [vmem:[#allocation2 + $0x18] ss:$12 sps:$4 sm:$0xff]   ;;  %v2689_v15 = vld [vmem:[#allocation2 + $0x1c] ss:$12 sps:$4 sm:$0xff]   ;;  %v2693_v19 = vld [vmem:[#allocation2 + $0x34] ss:$12 sps:$4 sm:$0xff]  }
  0x2c   :  { %2365 = vmatprep.subr.bf16.mxu1 %v2686_v13  ;;  %v2690_v16 = vld [vmem:[#allocation2 + $0x8] ss:$12 sps:$4 sm:$0xff]   ;;  %v60_v17 = vld [vmem:[%s3386_s0 + $0x20] sm:$0xff]  ;;  %v2691_v21 = vld [vmem:[#allocation2 + $0x30] ss:$12 sps:$4 sm:$0xff]  }
  0x2d   :  { %2149 = vmatmul.mubr.msk.bf16.vlgmr.msra.gmra.mrb[0].mxu0 %vm126_vm0, %v72_v5  ;;  %v61_v18 = vld [vmem:[%s3386_s0 + $0x28] sm:$0xff]  ;;  %v2702_v25 = vld [vmem:[#allocation2 + $0xf8] ss:$12 sps:$4 sm:$0xff]   ;;  %v62_v28 = vld [vmem:[%s3386_s0 + $0x30] sm:$0xff] }
  0x2e   :  { %193 = vmatprep.mubr.bf16.mxu0 %v2945_v0  ;;  %1131 = vmatpush1.bf16.msra.mxu0 %v2683_v10  ;;  %v2694_v20 = vld [vmem:[#allocation2 + $0xe0] ss:$12 sps:$4 sm:$0xff]   ;;  %v74_v24 = vpack.c.bf16 %v61_v18, %v60_v17  ;;  %v2695_v26 = vld [vmem:[#allocation2 + $0x48] ss:$12 sps:$4 sm:$0xff]   ;;  %v2701_v27 = vld [vmem:[#allocation2 + $0x64] ss:$12 sps:$4 sm:$0xff]  }
  0x2f   :  { %2157 = vmatmul.mubr.msk.bf16.vlgmr.msra.gmra.mrb[0].mxu1 %vm126_vm0, %v72_v5  ;;  %1132 = vmatprep.subr.bf16.mxu0 %v2689_v15  ;;  %v2697_v22 = vld [vmem:[#allocation2 + $0x4c] ss:$12 sps:$4 sm:$0xff]   ;;  %v2710_v32 = vld [vmem:[#allocation2 + $0x110] ss:$12 sps:$4 sm:$0xff]   ;;  %v2718_v37 = vld [vmem:[#allocation2 + $0x128] ss:$12 sps:$4 sm:$0xff]  }
  0x30   :  { %306 = vmatprep.mubr.bf16.mxu1 %v2945_v0  ;;  %2366 = vmatpush3.bf16.msra.mxu1 %v2690_v16  ;;  %v2698_v23 = vld [vmem:[#allocation2 + $0x20] ss:$12 sps:$4 sm:$0xff]   ;;  %v2706_v29 = vld [vmem:[#allocation2 + $0x38] ss:$12 sps:$4 sm:$0xff]   ;;  %v2705_v33 = vld [vmem:[#allocation2 + $0x7c] ss:$12 sps:$4 sm:$0xff]  }
  0x31   :  { %2367 = vmatprep.subr.bf16.mxu1 %v2694_v20  ;;  %v63_v30 = vld [vmem:[%s3386_s0 + $0x38] sm:$0xff]  ;;  %v2699_v31 = vld [vmem:[#allocation2 + $0x60] ss:$12 sps:$4 sm:$0xff]   ;;  %v2722_v41 = vld [vmem:[#allocation2 + $0x68] ss:$12 sps:$4 sm:$0xff]  }
  0x32   :  { %1133 = vmatpush1.bf16.msra.mxu0 %v2687_v14  ;;  %v75_v34 = vpack.c.bf16 %v63_v30, %v62_v28  ;;  %v2714_v35 = vld [vmem:[#allocation2 + $0x50] ss:$12 sps:$4 sm:$0xff]   ;;  %v2703_v36 = vld [vmem:[#allocation2 + $0x78] ss:$12 sps:$4 sm:$0xff]   ;;  %v2709_v39 = vld [vmem:[#allocation2 + $0x94] ss:$12 sps:$4 sm:$0xff]  }
  0x33   :  { %1134 = vmatprep.subr.bf16.mxu0 %v2693_v19  ;;  %v64_v38 = vld [vmem:[%s3386_s0 + $0x40] sm:$0xff]  ;;  %v65_v40 = vld [vmem:[%s3386_s0 + $0x48] sm:$0xff]  ;;  %v2707_v42 = vld [vmem:[#allocation2 + $0x90] ss:$12 sps:$4 sm:$0xff]  }
  0x34   :  { %2368 = vmatpush3.bf16.msra.mxu1 %v2698_v23  ;;  %v2713_v43 = vld [vmem:[#allocation2 + $0xac] ss:$12 sps:$4 sm:$0xff]   ;;  %v76_v45 = vpack.c.bf16 %v65_v40, %v64_v38  ;;  %v2711_v47 = vld [vmem:[#allocation2 + $0xa8] ss:$12 sps:$4 sm:$0xff]   ;;  %v2717_v49 = vld [vmem:[#allocation2 + $0xc4] ss:$12 sps:$4 sm:$0xff]  }
  0x35   :  { %2150 = vmatmul.mubr.msk.bf16.gmra.mrb[4].mxu0 %vm126_vm0, %v73_v12  ;;  %2369 = vmatprep.subr.bf16.mxu1 %v2702_v25  ;;  %v2726_v44 = vld [vmem:[#allocation2 + $0x140] ss:$12 sps:$4 sm:$0xff]   ;;  %v66_v48 = vld [vmem:[%s3386_s0 + $0x50] sm:$0xff]  ;;  %v2734_v50 = vld [vmem:[#allocation2 + $0x158] ss:$12 sps:$4 sm:$0xff]  }
  0x36   :  { %203 = vmatprep.mubr.bf16.mxu0 %v2945_v0  ;;  %1135 = vmatpush1.bf16.msra.mxu0 %v2691_v21  ;;  %v2730_v46 = vld [vmem:[#allocation2 + $0x80] ss:$12 sps:$4 sm:$0xff]   ;;  %v67_v51 = vld [vmem:[%s3386_s0 + $0x58] sm:$0xff]  ;;  %v2727_v63 = vld [vmem:[#allocation2 + $0x108] ss:$12 sps:$4 sm:$0xff]  }
  0x37   :  { %2158 = vmatmul.mubr.msk.bf16.gmra.mrb[4].mxu1 %vm126_vm0, %v73_v12  ;;  %1136 = vmatprep.subr.bf16.mxu0 %v2697_v22  ;;  %v2715_v52 = vld [vmem:[#allocation2 + $0xc0] ss:$12 sps:$4 sm:$0xff]   ;;  %v2721_v53 = vld [vmem:[#allocation2 + $0xdc] ss:$12 sps:$4 sm:$0xff]   ;;  %v2738_v54 = vld [vmem:[#allocation2 + $0x98] ss:$12 sps:$4 sm:$0xff]   ;;  %v77_v55 = vpack.c.bf16 %v67_v51, %v66_v48 }
  0x38   :  { %316 = vmatprep.mubr.bf16.mxu1 %v2945_v0  ;;  %2370 = vmatpush3.bf16.msra.mxu1 %v2706_v29  ;;  %v2719_v56 = vld [vmem:[#allocation2 + $0xd8] ss:$12 sps:$4 sm:$0xff]   ;;  %v2725_v57 = vld [vmem:[#allocation2 + $0xf4] ss:$12 sps:$4 sm:$0xff]   ;;  %v69_v59 = vld [vmem:[%s3386_s0 + $0x68] sm:$0xff] }
  0x39   :  { %2371 = vmatprep.subr.bf16.mxu1 %v2710_v32  ;;  %v68_v58 = vld [vmem:[%s3386_s0 + $0x60] sm:$0xff]  ;;  %v2723_v60 = vld [vmem:[#allocation2 + $0xf0] ss:$12 sps:$4 sm:$0xff]   ;;  %v2729_v61 = vld [vmem:[#allocation2 + $0x10c] ss:$12 sps:$4 sm:$0xff]  }
  0x3a   :  { %1137 = vmatpush1.bf16.msra.mxu0 %v2695_v26  ;;  %v78_v62 = vpack.c.bf16 %v69_v59, %v68_v58  ;;  %v2733_v1 = vld [vmem:[#allocation2 + $0x124] ss:$12 sps:$4 sm:$0xff]   ;;  %v71_v3 = vld [vmem:[%s3386_s0 + $0x78] sm:$0xff]  ;;  %v2731_v4 = vld [vmem:[#allocation2 + $0x120] ss:$12 sps:$4 sm:$0xff]  }
  0x3b   :  { %1138 = vmatprep.subr.bf16.mxu0 %v2701_v27  ;;  %v70_v2 = vld [vmem:[%s3386_s0 + $0x70] sm:$0xff]  ;;  %v2737_v5 = vld [vmem:[#allocation2 + $0x13c] ss:$12 sps:$4 sm:$0xff]   ;;  %v2735_v7 = vld [vmem:[#allocation2 + $0x138] ss:$12 sps:$4 sm:$0xff]  }
  0x3c   :  { %2372 = vmatpush3.bf16.msra.mxu1 %v2714_v35  ;;  %v79_v6 = vpack.c.bf16 %v71_v3, %v70_v2  ;;  %v2741_v8 = vld [vmem:[#allocation2 + $0x154] ss:$12 sps:$4 sm:$0xff]   ;;  %v2739_v9 = vld [vmem:[#allocation2 + $0x150] ss:$12 sps:$4 sm:$0xff]   ;;  %v2745_v11 = vld [vmem:[#allocation2 + $0x16c] ss:$12 sps:$4 sm:$0xff]  }
  0x3d   :  { %2151 = vmatmul.mubr.msk.bf16.gmra.mrb[8].mxu0 %vm126_vm0, %v74_v24  ;;  %2373 = vmatprep.subr.bf16.mxu1 %v2718_v37  ;;  %v2742_v10 = vld [vmem:[#allocation2 + $0x170] ss:$12 sps:$4 sm:$0xff]   ;;  %v2743_v12 = vld [vmem:[#allocation2 + $0x168] ss:$12 sps:$4 sm:$0xff]   ;;  %v84_v18 = vld [vmem:[%s3388_s2] sm:$0xf] }
  0x3e   :  { %213 = vmatprep.mubr.bf16.mxu0 %v2945_v0  ;;  %1139 = vmatpush1.bf16.msra.mxu0 %v2699_v31  ;;  %v2746_v13 = vld [vmem:[#allocation2 + $0xb0] ss:$12 sps:$4 sm:$0xff]   ;;  %v2750_v15 = vld [vmem:[#allocation2 + $0x248] ss:$12 sps:$4 sm:$0xff]   ;;  %v2751_v59 = vld [vmem:[#allocation2 + $0x198] ss:$12 sps:$4 sm:$0xff]  }
  0x3f   :  { %2159 = vmatmul.mubr.msk.bf16.gmra.mrb[8].mxu1 %vm126_vm0, %v74_v24  ;;  %1140 = vmatprep.subr.bf16.mxu0 %v2705_v33  ;;  %v2749_v14 = vld [vmem:[#allocation2 + $0x184] ss:$12 sps:$4 sm:$0xff]   ;;  %v2753_v48 = vld [vmem:[#allocation2 + $0x19c] ss:$12 sps:$4 sm:$0xff]  }
  0x40   :  { %326 = vmatprep.mubr.bf16.mxu1 %v2945_v0  ;;  %2374 = vmatpush3.bf16.msra.mxu1 %v2722_v41 }
  0x41   :  { %2375 = vmatprep.subr.bf16.mxu1 %v2726_v44 }
  0x42   :  { %1141 = vmatpush1.bf16.msra.mxu0 %v2703_v36 }
  0x43   :  { %1142 = vmatprep.subr.bf16.mxu0 %v2709_v39 }
  0x44   :  { %2376 = vmatpush3.bf16.msra.mxu1 %v2730_v46 }
  0x45   :  { %2152 = vmatmul.mubr.msk.bf16.gmra.mrb[12].mxu0 %vm126_vm0, %v75_v34  ;;  %2377 = vmatprep.subr.bf16.mxu1 %v2734_v50 }
  0x46   :  { %223 = vmatprep.mubr.bf16.mxu0 %v2945_v0  ;;  %1143 = vmatpush1.bf16.msra.mxu0 %v2707_v42  ;;  %v2747_v42 = vld [vmem:[#allocation2 + $0x180] ss:$12 sps:$4 sm:$0xff]  }
  0x47   :  { %2160 = vmatmul.mubr.msk.bf16.gmra.mrb[12].mxu1 %vm126_vm0, %v75_v34  ;;  %1144 = vmatprep.subr.bf16.mxu0 %v2713_v43  ;;  %v2754_v43 = vld [vmem:[#allocation2 + $0x188] ss:$12 sps:$4 sm:$0xff]  }
  0x48   :  { %336 = vmatprep.mubr.bf16.mxu1 %v2945_v0  ;;  %2378 = vmatpush3.bf16.msra.mxu1 %v2738_v54 }
  0x49   :  { %2379 = vmatprep.subr.bf16.mxu1 %v2742_v10 }
  0x4a   :  { %1145 = vmatpush1.bf16.msra.mxu0 %v2711_v47 }
  0x4b   :  { %1146 = vmatprep.subr.bf16.mxu0 %v2717_v49  ;;  %v2758_v49 = vld [vmem:[#allocation2 + $0x260] ss:$12 sps:$4 sm:$0xff]  }
  0x4c   :  { %2380 = vmatpush3.bf16.msra.mxu1 %v2746_v13 }
  0x4d   :  { %2153 = vmatmul.mubr.msk.bf16.gmra.mrb[16].mxu0 %vm126_vm0, %v76_v45  ;;  %2429 = vmatprep.subr.bf16.mxu1 %v2750_v15  ;;  %v2755_v15 = vld [vmem:[#allocation2 + $0x1b0] ss:$12 sps:$4 sm:$0xff]  }
  0x4e   :  { %233 = vmatprep.mubr.bf16.mxu0 %v2945_v0  ;;  %1147 = vmatpush1.bf16.msra.mxu0 %v2715_v52 }
  0x4f   :  { %2161 = vmatmul.mubr.msk.bf16.gmra.mrb[16].mxu1 %vm126_vm0, %v76_v45  ;;  %1148 = vmatprep.subr.bf16.mxu0 %v2721_v53 }
  0x50   :  { %346 = vmatprep.mubr.bf16.mxu1 %v2945_v0 }
  0x52   :  { %1149 = vmatpush1.bf16.msra.mxu0 %v2719_v56 }
  0x53   :  { %1150 = vmatprep.subr.bf16.mxu0 %v2725_v57 }
  0x55   :  { %2154 = vmatmul.mubr.msk.bf16.gmra.mrb[20].mxu0 %vm126_vm0, %v77_v55 }
  0x56   :  { %243 = vmatprep.mubr.bf16.mxu0 %v2945_v0  ;;  %1151 = vmatpush1.bf16.msra.mxu0 %v2723_v60 }
  0x57   :  { %2162 = vmatmul.mubr.msk.bf16.gmra.mrb[20].mxu1 %vm126_vm0, %v77_v55  ;;  %1152 = vmatprep.subr.bf16.mxu0 %v2729_v61 }
  0x58   :  { %356 = vmatprep.mubr.bf16.mxu1 %v2945_v0 }
  0x5a   :  { %1153 = vmatpush1.bf16.msra.mxu0 %v2727_v63  ;;  %v2757_v63 = vld [vmem:[#allocation2 + $0x1b4] ss:$12 sps:$4 sm:$0xff]  }
  0x5b   :  { %1154 = vmatprep.subr.bf16.mxu0 %v2733_v1  ;;  %v2762_v1 = vld [vmem:[#allocation2 + $0x1a0] ss:$12 sps:$4 sm:$0xff]  }
  0x5d   :  { %2155 = vmatmul.mubr.msk.bf16.gmra.mrb[24].mxu0 %vm126_vm0, %v78_v62 }
  0x5e   :  { %253 = vmatprep.mubr.bf16.mxu0 %v2945_v0  ;;  %1155 = vmatpush1.bf16.msra.mxu0 %v2731_v4 }
  0x5f   :  { %2163 = vmatmul.mubr.msk.bf16.gmra.mrb[24].mxu1 %vm126_vm0, %v78_v62  ;;  %1156 = vmatprep.subr.bf16.mxu0 %v2737_v5  ;;  %v2766_v5 = vld [vmem:[#allocation2 + $0x278] ss:$12 sps:$4 sm:$0xff]  }
  0x60   :  { %366 = vmatprep.mubr.bf16.mxu1 %v2945_v0  ;;  %v86_v0 = vlaneseq }
  0x62   :  { %1157 = vmatpush1.bf16.msra.mxu0 %v2735_v7  ;;  %v3106_v16 = vshrl.u32 %v86_v0, 7  ;;  %v2770_v0 = vld [vmem:[#allocation2 + $0x1b8] ss:$12 sps:$4 sm:$0xff]  }
  0x63   :  { %1158 = vmatprep.subr.bf16.mxu0 %v2741_v8 }
  0x64   :  { %v88_v17 = vsub.s32 0, %v3106_v16  ;;  %v92_v19 = vsub.s32 1, %v3106_v16  ;;  %v96_v23 = vsub.s32 2, %v3106_v16  ;;  %v100_v26 = vsub.s32 3, %v3106_v16 }
  0x65   :  { %2156 = vmatmul.mubr.msk.bf16.gmra.mrb[28].mxu0 %vm126_vm0, %v79_v6 }
  0x66   :  { %1159 = vmatpush1.bf16.msra.mxu0 %v2739_v9  ;;  %v3115_v20 = vrot.slane %v84_v18, %v88_v17  ;;  %v3119_v21 = vrot.slane %v84_v18, %v92_v19  ;;  %v3129_v32 = vrot.slane %v84_v18, %v96_v23  ;;  %v3131_v35 = vrot.slane %v84_v18, %v100_v26  ;;  %v2761_v26 = vld [vmem:[#allocation2 + $0x1cc] ss:$12 sps:$4 sm:$0xff]  }
  0x67   :  { %2164 = vmatmul.mubr.msk.bf16.gmra.mrb[28].mxu1 %vm126_vm0, %v79_v6  ;;  %1160 = vmatprep.subr.bf16.mxu0 %v2745_v11 }
  0x6a   :  { %1161 = vmatpush1.bf16.msra.mxu0 %v2743_v12 }
  0x6b   :  { %1243 = vmatprep.subr.bf16.mxu0 %v2749_v14 }
 0x100   :  { %v185_v22 = vpop.f32.mrb[0].mxu0 }
 0x101   :  { %v186_v24 = vadd.f32 %v185_v22, %v3115_v20  ;;  %v187_v25 = vpop.f32.mrb[1].mxu0 }
 0x102   :  { %v188_v27 = vadd.f32 %v187_v25, %v3119_v21  ;;  %v189_v28 = vpop.f32.mrb[2].mxu0  ;;  %v298_v39 = vpop.f32.mrb[0].mxu1 }
 0x103   :  { %v190_v29 = vadd.f32 %v189_v28, %v3115_v20  ;;  %v191_v30 = vpop.f32.mrb[3].mxu0  ;;  %v377_v33 = vmax.f32 %v186_v24, 0.0  ;;  %v299_v44 = vadd.f32 %v298_v39, %v3129_v32  ;;  %v300_v45 = vpop.f32.mrb[1].mxu1  ;;  %v2759_v39 = vld [vmem:[#allocation2 + $0x1c8] ss:$12 sps:$4 sm:$0xff]  }
 0x104   :  { %v192_v31 = vadd.f32 %v191_v30, %v3119_v21  ;;  %v378_v36 = vmax.f32 %v188_v27, 0.0  ;;  %v301_v50 = vadd.f32 %v300_v45, %v3131_v35  ;;  %v302_v51 = vpop.f32.mrb[2].mxu1  ;;  %v2774_v27 = vld [vmem:[#allocation2 + $0x290] ss:$12 sps:$4 sm:$0xff]  }
 0x105   :  { %v381_v34 = vmax.f32 %v190_v29, 0.0  ;;  %v379_v54 = vmax.f32 %v299_v44, 0.0  ;;  %v303_v55 = vadd.f32 %v302_v51, %v3129_v32  ;;  %v304_v56 = vpop.f32.mrb[3].mxu1  ;;  %v2778_v44 = vld [vmem:[#allocation2 + $0x1d0] ss:$12 sps:$4 sm:$0xff]  }
 0x106   :  { %v382_v37 = vmax.f32 %v192_v31, 0.0  ;;  %v380_v60 = vmax.f32 %v301_v50, 0.0  ;;  %v305_v61 = vadd.f32 %v304_v56, %v3131_v35 }
 0x107   :  { %v441_v38 = vpack.c.bf16 %v381_v34, %v377_v33  ;;  %v383_v2 = vmax.f32 %v303_v55, 0.0 }
 0x108   :  { %v442_v40 = vpack.c.bf16 %v382_v37, %v378_v36  ;;  %v195_v41 = vpop.f32.mrb[4].mxu0  ;;  %v384_v6 = vmax.f32 %v305_v61, 0.0 }
 0x109   :  { %v196_v46 = vadd.f32 %v195_v41, %v3115_v20  ;;  %v197_v47 = vpop.f32.mrb[5].mxu0  ;;  %v3141_v9 = vpack.c.bf16 %v383_v2, %v379_v54  ;;  %v2790_v2 = vld [vmem:[#allocation2 + $0x2c0] ss:$12 sps:$4 sm:$0xff]  }
 0x10a   :  { %v198_v52 = vadd.f32 %v197_v47, %v3119_v21  ;;  %v199_v53 = vpop.f32.mrb[6].mxu0  ;;  %1162 = vmatprep.mubr.bf16.mxu0 %v442_v40  ;;  %1388 = vmatprep.mubr.bf16.mxu1 %v442_v40  ;;  %v3143_v11 = vpack.c.bf16 %v384_v6, %v380_v60  ;;  %v308_v12 = vpop.f32.mrb[4].mxu1 }
 0x10b   :  { %v200_v57 = vadd.f32 %v199_v53, %v3115_v20  ;;  %v201_v58 = vpop.f32.mrb[7].mxu0  ;;  %1163 = vmatmul.mubr.bf16.vlgmr.msra.gmra.mrb[32].mxu0 %v441_v38  ;;  %1389 = vmatmul.mubr.bf16.vlgmr.msra.gmra.mrb[32].mxu1 %v441_v38  ;;  %v385_v3 = vmax.f32 %v196_v46, 0.0  ;;  %v309_v18 = vadd.f32 %v308_v12, %v3129_v32  ;;  %v310_v22 = vpop.f32.mrb[5].mxu1 }
 0x10c   :  { %v202_v62 = vadd.f32 %v201_v58, %v3119_v21  ;;  %1244 = vmatpush1.bf16.msra.mxu0 %v2747_v42  ;;  %2430 = vmatpush3.bf16.msra.mxu1 %v2754_v43  ;;  %v386_v7 = vmax.f32 %v198_v52, 0.0  ;;  %v311_v28 = vadd.f32 %v310_v22, %v3131_v35  ;;  %v312_v29 = vpop.f32.mrb[6].mxu1  ;;  %v2765_v43 = vld [vmem:[#allocation2 + $0x1e4] ss:$12 sps:$4 sm:$0xff]   ;;  %v2763_v58 = vld [vmem:[#allocation2 + $0x1e0] ss:$12 sps:$4 sm:$0xff]  }
 0x10d   :  { %v389_v4 = vmax.f32 %v200_v57, 0.0  ;;  %1245 = vmatprep.subr.bf16.mxu0 %v2753_v48  ;;  %2431 = vmatprep.subr.bf16.mxu1 %v2758_v49  ;;  %v387_v33 = vmax.f32 %v309_v18, 0.0  ;;  %v313_v34 = vadd.f32 %v312_v29, %v3129_v32  ;;  %v314_v36 = vpop.f32.mrb[7].mxu1  ;;  %v2782_v48 = vld [vmem:[#allocation2 + $0x2a8] ss:$12 sps:$4 sm:$0xff]  }
 0x10e   :  { %v390_v8 = vmax.f32 %v202_v62, 0.0  ;;  %v388_v40 = vmax.f32 %v311_v28, 0.0  ;;  %v315_v41 = vadd.f32 %v314_v36, %v3131_v35  ;;  %v2773_v22 = vld [vmem:[#allocation2 + $0x214] ss:$12 sps:$4 sm:$0xff]   ;;  %v2798_v28 = vld [vmem:[#allocation2 + $0x2d8] ss:$12 sps:$4 sm:$0xff]  }
 0x10f   :  { %v445_v10 = vpack.c.bf16 %v389_v4, %v385_v3  ;;  %v391_v45 = vmax.f32 %v313_v34, 0.0 }
 0x110   :  { %v446_v13 = vpack.c.bf16 %v390_v8, %v386_v7  ;;  %1246 = vmatpush1.bf16.msra.mxu0 %v2751_v59  ;;  %v205_v14 = vpop.f32.mrb[8].mxu0  ;;  %2432 = vmatpush3.bf16.msra.mxu1 %v2762_v1  ;;  %v392_v49 = vmax.f32 %v315_v41, 0.0  ;;  %v2786_v59 = vld [vmem:[#allocation2 + $0x1e8] ss:$12 sps:$4 sm:$0xff]   ;;  %v2802_v41 = vld [vmem:[#allocation2 + $0x218] ss:$12 sps:$4 sm:$0xff]  }
 0x111   :  { %v206_v24 = vadd.f32 %v205_v14, %v3115_v20  ;;  %v207_v25 = vpop.f32.mrb[9].mxu0  ;;  %1247 = vmatprep.subr.bf16.mxu0 %v2757_v63  ;;  %2433 = vmatprep.subr.bf16.mxu1 %v2766_v5  ;;  %v3153_v52 = vpack.c.bf16 %v391_v45, %v387_v33  ;;  %v2769_v1 = vld [vmem:[#allocation2 + $0x1fc] ss:$12 sps:$4 sm:$0xff]   ;;  %v2767_v14 = vld [vmem:[#allocation2 + $0x1f8] ss:$12 sps:$4 sm:$0xff]  }
 0x112   :  { %v208_v30 = vadd.f32 %v207_v25, %v3119_v21  ;;  %v209_v31 = vpop.f32.mrb[10].mxu0  ;;  %1172 = vmatprep.mubr.bf16.mxu0 %v446_v13  ;;  %1396 = vmatprep.mubr.bf16.mxu1 %v446_v13  ;;  %v3155_v54 = vpack.c.bf16 %v392_v49, %v388_v40  ;;  %v318_v55 = vpop.f32.mrb[8].mxu1  ;;  %v2771_v40 = vld [vmem:[#allocation2 + $0x210] ss:$12 sps:$4 sm:$0xff]  }
 0x113   :  { %v210_v37 = vadd.f32 %v209_v31, %v3115_v20  ;;  %v211_v38 = vpop.f32.mrb[11].mxu0  ;;  %1173 = vmatmul.mubr.bf16.gmra.mrb[36].mxu0 %v445_v10  ;;  %1397 = vmatmul.mubr.bf16.gmra.mrb[36].mxu1 %v445_v10  ;;  %v393_v46 = vmax.f32 %v206_v24, 0.0  ;;  %v319_v60 = vadd.f32 %v318_v55, %v3129_v32  ;;  %v320_v61 = vpop.f32.mrb[9].mxu1  ;;  %v2794_v24 = vld [vmem:[#allocation2 + $0x200] ss:$12 sps:$4 sm:$0xff]  }
 0x114   :  { %v212_v42 = vadd.f32 %v211_v38, %v3119_v21  ;;  %1248 = vmatpush1.bf16.msra.mxu0 %v2755_v15  ;;  %2434 = vmatpush3.bf16.msra.mxu1 %v2770_v0  ;;  %v394_v50 = vmax.f32 %v208_v30, 0.0  ;;  %v321_v3 = vadd.f32 %v320_v61, %v3131_v35  ;;  %v322_v4 = vpop.f32.mrb[10].mxu1 }
 0x115   :  { %v397_v47 = vmax.f32 %v210_v37, 0.0  ;;  %1249 = vmatprep.subr.bf16.mxu0 %v2761_v26  ;;  %2435 = vmatprep.subr.bf16.mxu1 %v2774_v27  ;;  %v395_v7 = vmax.f32 %v319_v60, 0.0  ;;  %v323_v8 = vadd.f32 %v322_v4, %v3129_v32  ;;  %v324_v10 = vpop.f32.mrb[11].mxu1  ;;  %v2781_v4 = vld [vmem:[#allocation2 + $0x244] ss:$12 sps:$4 sm:$0xff]  }
 0x116   :  { %v398_v51 = vmax.f32 %v212_v42, 0.0  ;;  %v396_v15 = vmax.f32 %v321_v3, 0.0  ;;  %v325_v0 = vadd.f32 %v324_v10, %v3131_v35 }
 0x117   :  { %v449_v53 = vpack.c.bf16 %v397_v47, %v393_v46  ;;  %v399_v25 = vmax.f32 %v323_v8, 0.0  ;;  %v2777_v46 = vld [vmem:[#allocation2 + $0x22c] ss:$12 sps:$4 sm:$0xff]   ;;  %v2806_v47 = vld [vmem:[#allocation2 + $0x2f0] ss:$12 sps:$4 sm:$0xff]  }
 0x118   :  { %v450_v56 = vpack.c.bf16 %v398_v51, %v394_v50  ;;  %1250 = vmatpush1.bf16.msra.mxu0 %v2759_v39  ;;  %v215_v57 = vpop.f32.mrb[12].mxu0  ;;  %2436 = vmatpush3.bf16.msra.mxu1 %v2778_v44  ;;  %v400_v29 = vmax.f32 %v325_v0, 0.0  ;;  %v2779_v0 = vld [vmem:[#allocation2 + $0x240] ss:$12 sps:$4 sm:$0xff]  }
 0x119   :  { %v216_v62 = vadd.f32 %v215_v57, %v3115_v20  ;;  %v217_v63 = vpop.f32.mrb[13].mxu0  ;;  %1251 = vmatprep.subr.bf16.mxu0 %v2765_v43  ;;  %2437 = vmatprep.subr.bf16.mxu1 %v2782_v48  ;;  %v3165_v33 = vpack.c.bf16 %v399_v25, %v395_v7 }
 0x11a   :  { %v218_v5 = vadd.f32 %v217_v63, %v3119_v21  ;;  %v219_v6 = vpop.f32.mrb[14].mxu0  ;;  %1182 = vmatprep.mubr.bf16.mxu0 %v450_v56  ;;  %1404 = vmatprep.mubr.bf16.mxu1 %v450_v56  ;;  %v3167_v36 = vpack.c.bf16 %v400_v29, %v396_v15  ;;  %v328_v37 = vpop.f32.mrb[12].mxu1  ;;  %v2810_v63 = vld [vmem:[#allocation2 + $0x230] ss:$12 sps:$4 sm:$0xff]  }
 0x11b   :  { %v220_v12 = vadd.f32 %v219_v6, %v3115_v20  ;;  %v221_v13 = vpop.f32.mrb[15].mxu0  ;;  %1183 = vmatmul.mubr.bf16.gmra.mrb[40].mxu0 %v449_v53  ;;  %1405 = vmatmul.mubr.bf16.gmra.mrb[40].mxu1 %v449_v53  ;;  %v401_v26 = vmax.f32 %v216_v62, 0.0  ;;  %v329_v42 = vadd.f32 %v328_v37, %v3129_v32  ;;  %v330_v43 = vpop.f32.mrb[13].mxu1  ;;  %v2775_v62 = vld [vmem:[#allocation2 + $0x228] ss:$12 sps:$4 sm:$0xff]  }
 0x11c   :  { %v222_v18 = vadd.f32 %v221_v13, %v3119_v21  ;;  %1252 = vmatpush1.bf16.msra.mxu0 %v2763_v58  ;;  %2438 = vmatpush3.bf16.msra.mxu1 %v2786_v59  ;;  %v402_v30 = vmax.f32 %v218_v5, 0.0  ;;  %v331_v48 = vadd.f32 %v330_v43, %v3131_v35  ;;  %v332_v49 = vpop.f32.mrb[14].mxu1  ;;  %v2783_v43 = vld [vmem:[#allocation2 + $0x258] ss:$12 sps:$4 sm:$0xff]  }
 0x11d   :  { %v405_v27 = vmax.f32 %v220_v12, 0.0  ;;  %1253 = vmatprep.subr.bf16.mxu0 %v2769_v1  ;;  %2439 = vmatprep.subr.bf16.mxu1 %v2790_v2  ;;  %v403_v53 = vmax.f32 %v329_v42, 0.0  ;;  %v333_v55 = vadd.f32 %v332_v49, %v3129_v32  ;;  %v334_v56 = vpop.f32.mrb[15].mxu1 }
 0x11e   :  { %v406_v31 = vmax.f32 %v222_v18, 0.0  ;;  %v404_v59 = vmax.f32 %v331_v48, 0.0  ;;  %v335_v60 = vadd.f32 %v334_v56, %v3131_v35 }
 0x11f   :  { %v453_v34 = vpack.c.bf16 %v405_v27, %v401_v26  ;;  %v407_v1 = vmax.f32 %v333_v55, 0.0  ;;  %v2785_v26 = vld [vmem:[#allocation2 + $0x25c] ss:$12 sps:$4 sm:$0xff]  }
 0x120   :  { %v454_v38 = vpack.c.bf16 %v406_v31, %v402_v30  ;;  %1254 = vmatpush1.bf16.msra.mxu0 %v2767_v14  ;;  %v225_v39 = vpop.f32.mrb[16].mxu0  ;;  %2440 = vmatpush3.bf16.msra.mxu1 %v2794_v24  ;;  %v408_v5 = vmax.f32 %v335_v60, 0.0 }
 0x121   :  { %v226_v44 = vadd.f32 %v225_v39, %v3115_v20  ;;  %v227_v45 = vpop.f32.mrb[17].mxu0  ;;  %1255 = vmatprep.subr.bf16.mxu0 %v2773_v22  ;;  %2441 = vmatprep.subr.bf16.mxu1 %v2798_v28  ;;  %v3177_v8 = vpack.c.bf16 %v407_v1, %v403_v53  ;;  %v2793_v1 = vld [vmem:[#allocation2 + $0x28c] ss:$12 sps:$4 sm:$0xff]  }
 0x122   :  { %v228_v50 = vadd.f32 %v227_v45, %v3119_v21  ;;  %v229_v51 = vpop.f32.mrb[18].mxu0  ;;  %1192 = vmatprep.mubr.bf16.mxu0 %v454_v38  ;;  %1412 = vmatprep.mubr.bf16.mxu1 %v454_v38  ;;  %v3179_v12 = vpack.c.bf16 %v408_v5, %v404_v59  ;;  %v338_v13 = vpop.f32.mrb[16].mxu1  ;;  %v2787_v59 = vld [vmem:[#allocation2 + $0x270] ss:$12 sps:$4 sm:$0xff]  }
 0x123   :  { %v230_v57 = vadd.f32 %v229_v51, %v3115_v20  ;;  %v231_v58 = vpop.f32.mrb[19].mxu0  ;;  %1193 = vmatmul.mubr.bf16.gmra.mrb[44].mxu0 %v453_v34  ;;  %1413 = vmatmul.mubr.bf16.gmra.mrb[44].mxu1 %v453_v34  ;;  %v409_v2 = vmax.f32 %v226_v44, 0.0  ;;  %v339_v18 = vadd.f32 %v338_v13, %v3129_v32  ;;  %v340_v22 = vpop.f32.mrb[17].mxu1 }
 0x124   :  { %v232_v61 = vadd.f32 %v231_v58, %v3119_v21  ;;  %1256 = vmatpush1.bf16.msra.mxu0 %v2771_v40  ;;  %2442 = vmatpush3.bf16.msra.mxu1 %v2802_v41  ;;  %v410_v6 = vmax.f32 %v228_v50, 0.0  ;;  %v341_v27 = vadd.f32 %v340_v22, %v3131_v35  ;;  %v342_v28 = vpop.f32.mrb[18].mxu1  ;;  %v2791_v22 = vld [vmem:[#allocation2 + $0x288] ss:$12 sps:$4 sm:$0xff]  }
 0x125   :  { %v413_v3 = vmax.f32 %v230_v57, 0.0  ;;  %1257 = vmatprep.subr.bf16.mxu0 %v2777_v46  ;;  %2443 = vmatprep.subr.bf16.mxu1 %v2806_v47  ;;  %v411_v31 = vmax.f32 %v339_v18, 0.0  ;;  %v343_v34 = vadd.f32 %v342_v28, %v3129_v32  ;;  %v344_v37 = vpop.f32.mrb[19].mxu1  ;;  %v2789_v47 = vld [vmem:[#allocation2 + $0x274] ss:$12 sps:$4 sm:$0xff]  }
 0x126   :  { %v414_v7 = vmax.f32 %v232_v61, 0.0  ;;  %v412_v40 = vmax.f32 %v341_v27, 0.0  ;;  %v345_v41 = vadd.f32 %v344_v37, %v3131_v35  ;;  %v2797_v27 = vld [vmem:[#allocation2 + $0x2a4] ss:$12 sps:$4 sm:$0xff]  }
 0x127   :  { %v457_v10 = vpack.c.bf16 %v413_v3, %v409_v2  ;;  %v415_v44 = vmax.f32 %v343_v34, 0.0 }
 0x128   :  { %v458_v14 = vpack.c.bf16 %v414_v7, %v410_v6  ;;  %1258 = vmatpush1.bf16.msra.mxu0 %v2775_v62  ;;  %v235_v15 = vpop.f32.mrb[20].mxu0  ;;  %2444 = vmatpush3.bf16.msra.mxu1 %v2810_v63  ;;  %v416_v48 = vmax.f32 %v345_v41, 0.0  ;;  %v2795_v41 = vld [vmem:[#allocation2 + $0x2a0] ss:$12 sps:$4 sm:$0xff]  }
 0x129   :  { %v236_v24 = vadd.f32 %v235_v15, %v3115_v20  ;;  %v237_v25 = vpop.f32.mrb[21].mxu0  ;;  %1259 = vmatprep.subr.bf16.mxu0 %v2781_v4  ;;  %v3189_v51 = vpack.c.bf16 %v415_v44, %v411_v31 }
 0x12a   :  { %v238_v29 = vadd.f32 %v237_v25, %v3119_v21  ;;  %v239_v30 = vpop.f32.mrb[22].mxu0  ;;  %1202 = vmatprep.mubr.bf16.mxu0 %v458_v14  ;;  %1420 = vmatprep.mubr.bf16.mxu1 %v458_v14  ;;  %v3191_v55 = vpack.c.bf16 %v416_v48, %v412_v40  ;;  %v348_v56 = vpop.f32.mrb[20].mxu1 }
 0x12b   :  { %v240_v38 = vadd.f32 %v239_v30, %v3115_v20  ;;  %v241_v39 = vpop.f32.mrb[23].mxu0  ;;  %1203 = vmatmul.mubr.bf16.gmra.mrb[48].mxu0 %v457_v10  ;;  %1421 = vmatmul.mubr.bf16.gmra.mrb[48].mxu1 %v457_v10  ;;  %v417_v45 = vmax.f32 %v236_v24, 0.0  ;;  %v349_v60 = vadd.f32 %v348_v56, %v3129_v32  ;;  %v350_v61 = vpop.f32.mrb[21].mxu1 }
 0x12c   :  { %v242_v42 = vadd.f32 %v241_v39, %v3119_v21  ;;  %1260 = vmatpush1.bf16.msra.mxu0 %v2779_v0  ;;  %v418_v49 = vmax.f32 %v238_v29, 0.0  ;;  %v351_v2 = vadd.f32 %v350_v61, %v3131_v35  ;;  %v352_v3 = vpop.f32.mrb[22].mxu1 }
 0x12d   :  { %v421_v46 = vmax.f32 %v240_v38, 0.0  ;;  %1261 = vmatprep.subr.bf16.mxu0 %v2785_v26  ;;  %v419_v6 = vmax.f32 %v349_v60, 0.0  ;;  %v353_v7 = vadd.f32 %v352_v3, %v3129_v32  ;;  %v354_v10 = vpop.f32.mrb[23].mxu1 }
 0x12e   :  { %v422_v50 = vmax.f32 %v242_v42, 0.0  ;;  %v420_v15 = vmax.f32 %v351_v2, 0.0  ;;  %v355_v0 = vadd.f32 %v354_v10, %v3131_v35 }
 0x12f   :  { %v461_v53 = vpack.c.bf16 %v421_v46, %v417_v45  ;;  %v423_v24 = vmax.f32 %v353_v7, 0.0  ;;  %v2801_v46 = vld [vmem:[#allocation2 + $0x2bc] ss:$12 sps:$4 sm:$0xff]  }
 0x130   :  { %v462_v57 = vpack.c.bf16 %v422_v50, %v418_v49  ;;  %1262 = vmatpush1.bf16.msra.mxu0 %v2783_v43  ;;  %v245_v58 = vpop.f32.mrb[24].mxu0  ;;  %v424_v28 = vmax.f32 %v355_v0, 0.0  ;;  %v2803_v0 = vld [vmem:[#allocation2 + $0x2d0] ss:$12 sps:$4 sm:$0xff]  }
 0x131   :  { %v246_v62 = vadd.f32 %v245_v58, %v3115_v20  ;;  %v247_v63 = vpop.f32.mrb[25].mxu0  ;;  %1263 = vmatprep.subr.bf16.mxu0 %v2789_v47  ;;  %v3201_v31 = vpack.c.bf16 %v423_v24, %v419_v6 }
 0x132   :  { %v248_v4 = vadd.f32 %v247_v63, %v3119_v21  ;;  %v249_v5 = vpop.f32.mrb[26].mxu0  ;;  %1212 = vmatprep.mubr.bf16.mxu0 %v462_v57  ;;  %1428 = vmatprep.mubr.bf16.mxu1 %v462_v57  ;;  %v3203_v37 = vpack.c.bf16 %v424_v28, %v420_v15  ;;  %v358_v38 = vpop.f32.mrb[24].mxu1  ;;  %v2799_v63 = vld [vmem:[#allocation2 + $0x2b8] ss:$12 sps:$4 sm:$0xff]  }
 0x133   :  { %v250_v13 = vadd.f32 %v249_v5, %v3115_v20  ;;  %v251_v14 = vpop.f32.mrb[27].mxu0  ;;  %1213 = vmatmul.mubr.bf16.gmra.mrb[52].mxu0 %v461_v53  ;;  %1429 = vmatmul.mubr.bf16.gmra.mrb[52].mxu1 %v461_v53  ;;  %v425_v25 = vmax.f32 %v246_v62, 0.0  ;;  %v359_v42 = vadd.f32 %v358_v38, %v3129_v32  ;;  %v360_v43 = vpop.f32.mrb[25].mxu1 }
 0x134   :  { %v252_v18 = vadd.f32 %v251_v14, %v3119_v21  ;;  %1264 = vmatpush1.bf16.msra.mxu0 %v2787_v59  ;;  %v426_v29 = vmax.f32 %v248_v4, 0.0  ;;  %v361_v47 = vadd.f32 %v360_v43, %v3131_v35  ;;  %v362_v48 = vpop.f32.mrb[26].mxu1  ;;  %v2805_v4 = vld [vmem:[#allocation2 + $0x2d4] ss:$12 sps:$4 sm:$0xff]  }
 0x135   :  { %v429_v26 = vmax.f32 %v250_v13, 0.0  ;;  %1265 = vmatprep.subr.bf16.mxu0 %v2793_v1  ;;  %v427_v53 = vmax.f32 %v359_v42, 0.0  ;;  %v363_v56 = vadd.f32 %v362_v48, %v3129_v32  ;;  %v364_v57 = vpop.f32.mrb[27].mxu1  ;;  %v2827_v42 = vld [vmem:[#allocation5 + $0x90] sm:$0xff]   ;;  %v2830_v48 = vld [vmem:[#allocation5 + $0x38] sm:$0xff]  }
 0x136   :  { %v430_v30 = vmax.f32 %v252_v18, 0.0  ;;  %v428_v60 = vmax.f32 %v361_v47, 0.0  ;;  %v365_v61 = vadd.f32 %v364_v57, %v3131_v35  ;;  %v2825_v43 = vld [vmem:[#allocation5 + $0x70] sm:$0xff]   ;;  %v2829_v47 = vld [vmem:[#allocation5 + $0x78] sm:$0xff]  }
 0x137   :  { %v465_v34 = vpack.c.bf16 %v429_v26, %v425_v25  ;;  %v431_v1 = vmax.f32 %v363_v56, 0.0 }
 0x138   :  { %v466_v39 = vpack.c.bf16 %v430_v30, %v426_v29  ;;  %1266 = vmatpush1.bf16.msra.mxu0 %v2791_v22  ;;  %v255_v40 = vpop.f32.mrb[28].mxu0  ;;  %v432_v5 = vmax.f32 %v365_v61, 0.0  ;;  %v2809_v22 = vld [vmem:[#allocation2 + $0x2ec] ss:$12 sps:$4 sm:$0xff]  }
 0x139   :  { %v256_v44 = vadd.f32 %v255_v40, %v3115_v20  ;;  %v257_v45 = vpop.f32.mrb[29].mxu0  ;;  %1267 = vmatprep.subr.bf16.mxu0 %v2797_v27  ;;  %v3213_v10 = vpack.c.bf16 %v431_v1, %v427_v53  ;;  %v2834_v53 = vld [vmem:[#allocation5 + $0xb8] sm:$0xff]  }
 0x13a   :  { %v258_v49 = vadd.f32 %v257_v45, %v3119_v21  ;;  %v259_v50 = vpop.f32.mrb[30].mxu0  ;;  %1222 = vmatprep.mubr.bf16.mxu0 %v466_v39  ;;  %1436 = vmatprep.mubr.bf16.mxu1 %v466_v39  ;;  %v468_v13 = vpack.c.bf16 %v432_v5, %v428_v60  ;;  %v368_v14 = vpop.f32.mrb[28].mxu1  ;;  %v2828_v45 = vld [vmem:[#allocation5 + $0x98] sm:$0xff]  }
 0x13b   :  { %v260_v58 = vadd.f32 %v259_v50, %v3115_v20  ;;  %v261_v59 = vpop.f32.mrb[31].mxu0  ;;  %1223 = vmatmul.mubr.bf16.gmra.mrb[56].mxu0 %v465_v34  ;;  %1437 = vmatmul.mubr.bf16.gmra.mrb[56].mxu1 %v465_v34  ;;  %v433_v2 = vmax.f32 %v256_v44, 0.0  ;;  %v370_v18 = vpop.f32.mrb[29].mxu1  ;;  %v2807_v34 = vld [vmem:[#allocation2 + $0x2e8] ss:$12 sps:$4 sm:$0xff]  }
 0x13c   :  { %v262_v62 = vadd.f32 %v261_v59, %v3119_v21  ;;  %1268 = vmatpush1.bf16.msra.mxu0 %v2795_v41  ;;  %v434_v6 = vmax.f32 %v258_v49, 0.0  ;;  %v369_v21 = vadd.f32 %v368_v14, %v3129_v32  ;;  %v371_v24 = vadd.f32 %v370_v18, %v3131_v35  ;;  %v372_v25 = vpop.f32.mrb[30].mxu1  ;;  %v2826_v44 = vld [vmem:[#allocation5 + $0x30] sm:$0xff]   ;;  %v2832_v49 = vld [vmem:[#allocation5 + $0xa8] sm:$0xff]  }
 0x13d   :  { %v437_v3 = vmax.f32 %v260_v58, 0.0  ;;  %1269 = vmatprep.subr.bf16.mxu0 %v2801_v46  ;;  %v373_v27 = vadd.f32 %v372_v25, %v3129_v32  ;;  %v374_v28 = vpop.f32.mrb[31].mxu1  ;;  %v2811_v32 = vld [vmem:[#allocation5 + $0x40] sm:$0xff]   ;;  %v2833_v50 = vld [vmem:[#allocation5 + $0xb0] sm:$0xff]  }
 0x13e   :  { %v438_v7 = vmax.f32 %v262_v62, 0.0  ;;  %v435_v26 = vmax.f32 %v369_v21, 0.0  ;;  %v436_v29 = vmax.f32 %v371_v24, 0.0  ;;  %v375_v30 = vadd.f32 %v374_v28, %v3131_v35  ;;  %v2812_v35 = vld [vmem:[#allocation5] sm:$0xff]  }
 0x13f   :  { %v469_v20 = vpack.c.bf16 %v437_v3, %v433_v2  ;;  %v439_v38 = vmax.f32 %v373_v27, 0.0  ;;  %v2831_v46 = vld [vmem:[#allocation5 + $0xa0] sm:$0xff]  }
 0x140   :  { %v470_v15 = vpack.c.bf16 %v438_v7, %v434_v6  ;;  %1270 = vmatpush1.bf16.msra.mxu0 %v2799_v63  ;;  %v440_v39 = vmax.f32 %v375_v30, 0.0 }
 0x141   :  { %1271 = vmatprep.subr.bf16.mxu0 %v2805_v4  ;;  %v471_v40 = vpack.c.bf16 %v439_v38, %v435_v26 }
 0x142   :  { %1232 = vmatprep.mubr.bf16.mxu0 %v470_v15  ;;  %1444 = vmatprep.mubr.bf16.mxu1 %v470_v15  ;;  %v472_v41 = vpack.c.bf16 %v440_v39, %v436_v29 }
 0x143   :  { %1233 = vmatmul.mubr.bf16.gmra.mrb[60].mxu0 %v469_v20  ;;  %1445 = vmatmul.mubr.bf16.gmra.mrb[60].mxu1 %v469_v20 }
 0x144   :  { %1272 = vmatpush1.bf16.msra.mxu0 %v2803_v0  ;;  %1275 = vmatprep.mubr.bf16.mxu0 %v3143_v11 }
 0x145   :  { %1273 = vmatprep.subr.bf16.mxu0 %v2809_v22  ;;  %1485 = vmatprep.mubr.bf16.mxu1 %v3143_v11  ;;  %v2814_v11 = vld [vmem:[#allocation5 + $0x8] sm:$0xff]  }
 0x148   :  { %1274 = vmatpush1.bf16.msra.mxu0 %v2807_v34 }
 0x149   :  { %2493 = vmatprep.subr.bf16.mxu0 %v2811_v32 }
 0x14b   :  { %1276 = vmatmul.mubr.bf16.vlgmr.msra.gmra.mrb[32].mxu0 %v3141_v9  ;;  %1486 = vmatmul.mubr.bf16.vlgmr.msra.gmra.mrb[64].mxu1 %v3141_v9  ;;  %v2813_v9 = vld [vmem:[#allocation5 + $0x48] sm:$0xff]  }
 0x14c   :  { %1285 = vmatprep.mubr.bf16.mxu0 %v3155_v54  ;;  %1493 = vmatprep.mubr.bf16.mxu1 %v3155_v54  ;;  %v2816_v54 = vld [vmem:[#allocation5 + $0x10] sm:$0xff]  }
 0x14d   :  { %2494 = vmatpush3.bf16.msra.mxu0 %v2812_v35 }
 0x14e   :  { %2495 = vmatprep.subr.bf16.mxu0 %v2813_v9 }
 0x151   :  { %2496 = vmatpush3.bf16.msra.mxu0 %v2814_v11 }
 0x153   :  { %1286 = vmatmul.mubr.bf16.gmra.mrb[36].mxu0 %v3153_v52  ;;  %1494 = vmatmul.mubr.bf16.gmra.mrb[68].mxu1 %v3153_v52  ;;  %v2815_v52 = vld [vmem:[#allocation5 + $0x50] sm:$0xff]  }
 0x154   :  { %1295 = vmatprep.mubr.bf16.mxu0 %v3167_v36  ;;  %1501 = vmatprep.mubr.bf16.mxu1 %v3167_v36  ;;  %v2818_v36 = vld [vmem:[#allocation5 + $0x18] sm:$0xff]  }
 0x155   :  { %2497 = vmatprep.subr.bf16.mxu0 %v2815_v52 }
 0x156   :  { %2498 = vmatpush3.bf16.msra.mxu0 %v2816_v54 }
 0x15b   :  { %1296 = vmatmul.mubr.bf16.gmra.mrb[40].mxu0 %v3165_v33  ;;  %1502 = vmatmul.mubr.bf16.gmra.mrb[72].mxu1 %v3165_v33  ;;  %v2817_v33 = vld [vmem:[#allocation5 + $0x58] sm:$0xff]  }
 0x15c   :  { %1305 = vmatprep.mubr.bf16.mxu0 %v3179_v12  ;;  %1509 = vmatprep.mubr.bf16.mxu1 %v3179_v12  ;;  %v2820_v12 = vld [vmem:[#allocation5 + $0x20] sm:$0xff]  }
 0x15d   :  { %2499 = vmatprep.subr.bf16.mxu0 %v2817_v33 }
 0x15e   :  { %2500 = vmatpush3.bf16.msra.mxu0 %v2818_v36 }
 0x163   :  { %1306 = vmatmul.mubr.bf16.gmra.mrb[44].mxu0 %v3177_v8  ;;  %1510 = vmatmul.mubr.bf16.gmra.mrb[76].mxu1 %v3177_v8  ;;  %v2819_v8 = vld [vmem:[#allocation5 + $0x60] sm:$0xff]  }
 0x164   :  { %1315 = vmatprep.mubr.bf16.mxu0 %v3191_v55  ;;  %1517 = vmatprep.mubr.bf16.mxu1 %v3191_v55  ;;  %v2822_v55 = vld [vmem:[#allocation5 + $0x68] sm:$0xff]  }
 0x165   :  { %2501 = vmatprep.subr.bf16.mxu0 %v2819_v8 }
 0x166   :  { %2502 = vmatpush3.bf16.msra.mxu0 %v2820_v12 }
 0x167   :  { %2503 = vmatprep.subr.bf16.mxu0 %v2822_v55 }
 0x16b   :  { %1316 = vmatmul.mubr.bf16.gmra.mrb[48].mxu0 %v3189_v51  ;;  %1518 = vmatmul.mubr.bf16.gmra.mrb[80].mxu1 %v3189_v51  ;;  %v2821_v51 = vld [vmem:[#allocation5 + $0x80] sm:$0xff]  }
 0x16c   :  { %1325 = vmatprep.mubr.bf16.mxu0 %v3203_v37  ;;  %1525 = vmatprep.mubr.bf16.mxu1 %v3203_v37  ;;  %v2824_v37 = vld [vmem:[#allocation5 + $0x88] sm:$0xff]  }
 0x16d   :  { %2573 = vmatprep.subr.bf16.mxu1 %v2821_v51 }
 0x16e   :  { %2574 = vmatpush3.bf16.msra.mxu1 %v2821_v51  ;;  %v601_v51 = vld [vmem:[%s3390_s4] sm:$0x7] }
 0x16f   :  { %2575 = vmatprep.subr.bf16.mxu1 %v2824_v37 }
 0x172   :  { %2576 = vmatpush3.bf16.msra.mxu1 %v2824_v37  ;;  %v3278_v37 = vrot.slane %v601_v51, %v88_v17 }
 0x173   :  { %1326 = vmatmul.mubr.bf16.gmra.mrb[52].mxu0 %v3201_v31  ;;  %1526 = vmatmul.mubr.bf16.gmra.mrb[84].mxu1 %v3201_v31  ;;  %v2823_v31 = vld [vmem:[#allocation5 + $0x28] sm:$0xff]  }
 0x174   :  { %1335 = vmatprep.mubr.bf16.mxu0 %v468_v13  ;;  %1533 = vmatprep.mubr.bf16.mxu1 %v468_v13 }
 0x175   :  { %2504 = vmatpush3.bf16.msra.mxu0 %v2823_v31  ;;  %2577 = vmatprep.subr.bf16.mxu1 %v2827_v42 }
 0x176   :  { %2578 = vmatpush3.bf16.msra.mxu1 %v2827_v42  ;;  %2505 = vmatprep.subr.bf16.mxu0 %v2825_v43  ;;  %v3282_v42 = vrot.slane %v601_v51, %v96_v23  ;;  %v3286_v43 = vrot.slane %v601_v51, %v92_v19 }
 0x177   :  { %2579 = vmatprep.subr.bf16.mxu1 %v2828_v45 }
 0x179   :  { %2506 = vmatpush3.bf16.msra.mxu0 %v2826_v44 }
 0x17a   :  { %2580 = vmatpush3.bf16.msra.mxu1 %v2828_v45  ;;  %2507 = vmatprep.subr.bf16.mxu0 %v2829_v47 }
 0x17b   :  { %1336 = vmatmul.mubr.bf16.gmra.mrb[56].mxu0 %v3213_v10  ;;  %1534 = vmatmul.mubr.bf16.gmra.mrb[88].mxu1 %v3213_v10 }
 0x17c   :  { %1345 = vmatprep.mubr.bf16.mxu0 %v472_v41  ;;  %1541 = vmatprep.mubr.bf16.mxu1 %v472_v41 }
 0x17d   :  { %2581 = vmatprep.subr.bf16.mxu1 %v2831_v46  ;;  %2508 = vmatpush3.bf16.msra.mxu0 %v2830_v48 }
 0x17e   :  { %2582 = vmatpush3.bf16.msra.mxu1 %v2831_v46 }
 0x17f   :  { %2583 = vmatprep.subr.bf16.mxu1 %v2832_v49 }
 0x182   :  { %2584 = vmatpush3.bf16.msra.mxu1 %v2832_v49 }
 0x183   :  { %1346 = vmatmul.mubr.bf16.gmra.mrb[60].mxu0 %v471_v40  ;;  %1542 = vmatmul.mubr.bf16.gmra.mrb[92].mxu1 %v471_v40 }
 0x184   :  { %2585 = vmatprep.subr.bf16.mxu1 %v2833_v50 }
 0x186   :  { %2586 = vmatpush3.bf16.msra.mxu1 %v2833_v50 }
 0x187   :  { %2587 = vmatprep.subr.bf16.mxu1 %v2834_v53 }
 0x18a   :  { %2588 = vmatpush3.bf16.msra.mxu1 %v2834_v53 }
 0x1de   :  { %v2381_v56 = vpop.f32.mrb[32].mxu1 }
 0x1df   :  { %v2382_v57 = vpop.f32.mrb[33].mxu1 }
 0x1e0   :  { %v2383_v58 = vadd.f32 %v2382_v57, %v2381_v56  ;;  %v2384_v59 = vpop.f32.mrb[34].mxu1 }
 0x1e1   :  { %v2385_v60 = vpop.f32.mrb[35].mxu1 }
 0x1e2   :  { %v2386_v61 = vadd.f32 %v2385_v60, %v2384_v59  ;;  %v1391_v49 = vadd.f32 %v2383_v58, %v3282_v42 }
 0x1e4   :  { %v1394_v16 = vadd.f32 %v2386_v61, %v3282_v42 }
 0x1e6   :  { %v2387_v62 = vpop.f32.mrb[36].mxu1 }
 0x1e7   :  { %v2388_v63 = vpop.f32.mrb[37].mxu1 }
 0x1e8   :  { %v3245_v1 = vadd.f32 %v2388_v63, %v2387_v62  ;;  %v2390_v2 = vpop.f32.mrb[38].mxu1 }
 0x1e9   :  { %v2391_v3 = vpop.f32.mrb[39].mxu1 }
 0x1ea   :  { %v3247_v4 = vadd.f32 %v2391_v3, %v2390_v2  ;;  %v1399_v61 = vadd.f32 %v3245_v1, %v3282_v42 }
 0x1ee   :  { %v2393_v5 = vpop.f32.mrb[40].mxu1 }
 0x1ef   :  { %v2394_v6 = vpop.f32.mrb[41].mxu1 }
 0x1f0   :  { %v3249_v7 = vadd.f32 %v2394_v6, %v2393_v5  ;;  %v2396_v10 = vpop.f32.mrb[42].mxu1 }
 0x1f1   :  { %v2397_v20 = vpop.f32.mrb[43].mxu1 }
 0x1f2   :  { %v3251_v13 = vadd.f32 %v2397_v20, %v2396_v10 }
 0x1f6   :  { %v2399_v14 = vpop.f32.mrb[44].mxu1 }
 0x1f7   :  { %v2400_v15 = vpop.f32.mrb[45].mxu1 }
 0x1f8   :  { %v3253_v0 = vadd.f32 %v2400_v15, %v2399_v14  ;;  %v2402_v21 = vpop.f32.mrb[46].mxu1 }
 0x1f9   :  { %v2403_v18 = vpop.f32.mrb[47].mxu1 }
 0x1fa   :  { %v3255_v22 = vadd.f32 %v2403_v18, %v2402_v21 }
 0x1fe   :  { %v2405_v24 = vpop.f32.mrb[48].mxu1 }
 0x1ff   :  { %v2406_v25 = vpop.f32.mrb[49].mxu1 }
 0x200   :  { %v3257_v26 = vadd.f32 %v2406_v25, %v2405_v24  ;;  %v2408_v27 = vpop.f32.mrb[50].mxu1 }
 0x201   :  { %v2409_v28 = vpop.f32.mrb[51].mxu1 }
 0x202   :  { %v3259_v29 = vadd.f32 %v2409_v28, %v2408_v27 }
 0x206   :  { %v2411_v30 = vpop.f32.mrb[52].mxu1 }
 0x207   :  { %v2412_v34 = vpop.f32.mrb[53].mxu1 }
 0x208   :  { %v3261_v38 = vadd.f32 %v2412_v34, %v2411_v30  ;;  %v2414_v39 = vpop.f32.mrb[54].mxu1 }
 0x209   :  { %v2415_v40 = vpop.f32.mrb[55].mxu1 }
 0x20a   :  { %v3263_v41 = vadd.f32 %v2415_v40, %v2414_v39 }
 0x20e   :  { %v2417_v32 = vpop.f32.mrb[56].mxu1 }
 0x20f   :  { %v2418_v35 = vpop.f32.mrb[57].mxu1 }
 0x210   :  { %v3265_v9 = vadd.f32 %v2418_v35, %v2417_v32  ;;  %v2420_v11 = vpop.f32.mrb[58].mxu1 }
 0x211   :  { %v2421_v52 = vpop.f32.mrb[59].mxu1 }
 0x212   :  { %v3267_v54 = vadd.f32 %v2421_v52, %v2420_v11  ;;  %v1402_v11 = vadd.f32 %v3247_v4, %v3282_v42 }
 0x216   :  { %v2423_v33 = vpop.f32.mrb[60].mxu1 }
 0x217   :  { %v2424_v36 = vpop.f32.mrb[61].mxu1 }
 0x218   :  { %v3269_v8 = vadd.f32 %v2424_v36, %v2423_v33  ;;  %v2426_v12 = vpop.f32.mrb[62].mxu1 }
 0x219   :  { %v2427_v55 = vpop.f32.mrb[63].mxu1 }
 0x21a   :  { %v3274_v31 = vadd.f32 %v2427_v55, %v2426_v12 }
 0x21e   :  { %v1277_v44 = vpop.f32.mrb[32].mxu0  ;;  %v2445_v45 = vpop.f32.mrb[64].mxu1 }
 0x21f   :  { %v2605_v46 = vadd.f32 %v1277_v44, %v3278_v37  ;;  %v1279_v47 = vpop.f32.mrb[33].mxu0  ;;  %v2446_v48 = vpop.f32.mrb[65].mxu1 }
 0x220   :  { %v2606_v50 = vadd.f32 %v1279_v47, %v3286_v43  ;;  %v2447_v17 = vadd.f32 %v2446_v48, %v2445_v45  ;;  %v1281_v53 = vpop.f32.mrb[34].mxu0  ;;  %v2448_v56 = vpop.f32.mrb[66].mxu1 }
 0x221   :  { %v2607_v23 = vadd.f32 %v1281_v53, %v3278_v37  ;;  %v1283_v57 = vpop.f32.mrb[35].mxu0  ;;  %v2449_v59 = vpop.f32.mrb[67].mxu1  ;;  %v1550_v63 = vmax.f32 %v2605_v46, 0.0 }
 0x222   :  { %v1488_v19 = vadd.f32 %v2447_v17, %v1391_v49  ;;  %v2608_v60 = vadd.f32 %v1283_v57, %v3286_v43  ;;  %v2450_v62 = vadd.f32 %v2449_v59, %v2448_v56  ;;  %v1551_v3 = vmax.f32 %v2606_v50, 0.0 }
 0x223   :  { %v1553_v2 = vmax.f32 %v2607_v23, 0.0  ;;  %v1407_v56 = vadd.f32 %v3249_v7, %v3282_v42 }
 0x224   :  { %v1554_v5 = vmax.f32 %v2608_v60, 0.0  ;;  %v1491_v58 = vadd.f32 %v2450_v62, %v1394_v16  ;;  %v1552_v10 = vmax.f32 %v1488_v19, 0.0 }
 0x225   :  { %v1598_v6 = vpack.c.bf16 %v1553_v2, %v1550_v63  ;;  %v1410_v2 = vadd.f32 %v3251_v13, %v3282_v42 }
 0x226   :  { %v1599_v20 = vpack.c.bf16 %v1554_v5, %v1551_v3  ;;  %v1555_v14 = vmax.f32 %v1491_v58, 0.0  ;;  %v1287_v15 = vpop.f32.mrb[36].mxu0  ;;  %v2451_v21 = vpop.f32.mrb[68].mxu1 }
 0x227   :  { %v2609_v18 = vadd.f32 %v1287_v15, %v3278_v37  ;;  %v1289_v24 = vpop.f32.mrb[37].mxu0  ;;  %v2452_v25 = vpop.f32.mrb[69].mxu1 }
 0x228   :  { %v2610_v27 = vadd.f32 %v1289_v24, %v3286_v43  ;;  %v2453_v28 = vadd.f32 %v2452_v25, %v2451_v21  ;;  %v1291_v30 = vpop.f32.mrb[38].mxu0  ;;  %v2454_v34 = vpop.f32.mrb[70].mxu1  ;;  %1853 = vmatprep.mubr.bf16.mxu0 %v1599_v20  ;;  %v1600_v39 = vpack.c.bf16 %v1555_v14, %v1552_v10 }
 0x229   :  { %v2611_v40 = vadd.f32 %v1291_v30, %v3278_v37  ;;  %v1293_v32 = vpop.f32.mrb[39].mxu0  ;;  %v2455_v35 = vpop.f32.mrb[71].mxu1  ;;  %1854 = vmatmul.mubr.bf16.vlgmr.msra.gmra.mrb[64].mxu0 %v1598_v6  ;;  %v1556_v1 = vmax.f32 %v2609_v18, 0.0  ;;  %v1415_v30 = vadd.f32 %v3253_v0, %v3282_v42 }
 0x22a   :  { %v1496_v52 = vadd.f32 %v2453_v28, %v1399_v61  ;;  %v2612_v33 = vadd.f32 %v1293_v32, %v3286_v43  ;;  %v2456_v36 = vadd.f32 %v2455_v35, %v2454_v34  ;;  %2589 = vmatprep.mubr.bf16.mxu1 %v1600_v39  ;;  %v1557_v51 = vmax.f32 %v2610_v27, 0.0 }
 0x22b   :  { %v1559_v12 = vmax.f32 %v2611_v40, 0.0 }
 0x22c   :  { %v1560_v55 = vmax.f32 %v2612_v33, 0.0  ;;  %v1499_v44 = vadd.f32 %v2456_v36, %v1402_v11  ;;  %v1558_v46 = vmax.f32 %v1496_v52, 0.0  ;;  %v1418_v36 = vadd.f32 %v3255_v22, %v3282_v42 }
 0x22d   :  { %v1601_v45 = vpack.c.bf16 %v1559_v12, %v1556_v1 }
 0x22e   :  { %v1602_v47 = vpack.c.bf16 %v1560_v55, %v1557_v51  ;;  %v1561_v48 = vmax.f32 %v1499_v44, 0.0  ;;  %v1297_v49 = vpop.f32.mrb[40].mxu0  ;;  %v2457_v50 = vpop.f32.mrb[72].mxu1 }
 0x22f   :  { %v2613_v17 = vadd.f32 %v1297_v49, %v3278_v37  ;;  %v1299_v53 = vpop.f32.mrb[41].mxu0  ;;  %v2458_v4 = vpop.f32.mrb[73].mxu1 }
 0x230   :  { %v1603_v23 = vpack.c.bf16 %v1561_v48, %v1558_v46  ;;  %v2614_v57 = vadd.f32 %v1299_v53, %v3286_v43  ;;  %v2459_v59 = vadd.f32 %v2458_v4, %v2457_v50  ;;  %v1301_v16 = vpop.f32.mrb[42].mxu0  ;;  %v2460_v19 = vpop.f32.mrb[74].mxu1  ;;  %1861 = vmatprep.mubr.bf16.mxu0 %v1602_v47 }
 0x231   :  { %v2615_v60 = vadd.f32 %v1301_v16, %v3278_v37  ;;  %v1303_v62 = vpop.f32.mrb[43].mxu0  ;;  %v2461_v63 = vpop.f32.mrb[75].mxu1  ;;  %1862 = vmatmul.mubr.bf16.gmra.mrb[68].mxu0 %v1601_v45  ;;  %v1562_v7 = vmax.f32 %v2613_v17, 0.0 }
 0x232   :  { %v1504_v3 = vadd.f32 %v2459_v59, %v1407_v56  ;;  %v2616_v5 = vadd.f32 %v1303_v62, %v3286_v43  ;;  %v2462_v58 = vadd.f32 %v2461_v63, %v2460_v19  ;;  %2590 = vmatmul.mubr.bf16.vlgmr.msra.gmra.mrb[96].mxu1 %v1603_v23  ;;  %v1563_v10 = vmax.f32 %v2614_v57, 0.0 }
 0x233   :  { %v1565_v6 = vmax.f32 %v2615_v60, 0.0  ;;  %v1423_v23 = vadd.f32 %v3257_v26, %v3282_v42 }
 0x234   :  { %v1566_v20 = vmax.f32 %v2616_v5, 0.0  ;;  %v1507_v14 = vadd.f32 %v2462_v58, %v1410_v2  ;;  %v1564_v21 = vmax.f32 %v1504_v3, 0.0  ;;  %v1426_v3 = vadd.f32 %v3259_v29, %v3282_v42 }
 0x235   :  { %v1604_v15 = vpack.c.bf16 %v1565_v6, %v1562_v7 }
 0x236   :  { %v1605_v18 = vpack.c.bf16 %v1566_v20, %v1563_v10  ;;  %v1567_v24 = vmax.f32 %v1507_v14, 0.0  ;;  %v1307_v25 = vpop.f32.mrb[44].mxu0  ;;  %v2463_v61 = vpop.f32.mrb[76].mxu1 }
 0x237   :  { %v2617_v27 = vadd.f32 %v1307_v25, %v3278_v37  ;;  %v1309_v28 = vpop.f32.mrb[45].mxu0  ;;  %v2464_v13 = vpop.f32.mrb[77].mxu1 }
 0x238   :  { %v2618_v34 = vadd.f32 %v1309_v28, %v3286_v43  ;;  %v2465_v39 = vadd.f32 %v2464_v13, %v2463_v61  ;;  %v1311_v40 = vpop.f32.mrb[46].mxu0  ;;  %v2466_v32 = vpop.f32.mrb[78].mxu1  ;;  %1869 = vmatprep.mubr.bf16.mxu0 %v1605_v18  ;;  %v1606_v35 = vpack.c.bf16 %v1567_v24, %v1564_v21  ;;  %v1431_v13 = vadd.f32 %v3261_v38, %v3282_v42 }
 0x239   :  { %v2619_v11 = vadd.f32 %v1311_v40, %v3278_v37  ;;  %v1313_v52 = vpop.f32.mrb[47].mxu0  ;;  %v2467_v33 = vpop.f32.mrb[79].mxu1  ;;  %1870 = vmatmul.mubr.bf16.gmra.mrb[72].mxu0 %v1604_v15  ;;  %v1568_v0 = vmax.f32 %v2617_v27, 0.0 }
 0x23a   :  { %v1512_v1 = vadd.f32 %v2465_v39, %v1415_v30  ;;  %v2620_v12 = vadd.f32 %v1313_v52, %v3286_v43  ;;  %v2468_v51 = vadd.f32 %v2467_v33, %v2466_v32  ;;  %2593 = vmatprep.mubr.bf16.mxu1 %v1606_v35  ;;  %v1569_v44 = vmax.f32 %v2618_v34, 0.0 }
 0x23b   :  { %v1571_v55 = vmax.f32 %v2619_v11, 0.0  ;;  %v1434_v33 = vadd.f32 %v3263_v41, %v3282_v42 }
 0x23c   :  { %v1572_v45 = vmax.f32 %v2620_v12, 0.0  ;;  %v1515_v46 = vadd.f32 %v2468_v51, %v1418_v36  ;;  %v1570_v48 = vmax.f32 %v1512_v1, 0.0 }
 0x23d   :  { %v1607_v47 = vpack.c.bf16 %v1571_v55, %v1568_v0 }
 0x23e   :  { %v1608_v49 = vpack.c.bf16 %v1572_v45, %v1569_v44  ;;  %v1573_v50 = vmax.f32 %v1515_v46, 0.0  ;;  %v1317_v17 = vpop.f32.mrb[48].mxu0  ;;  %v2469_v53 = vpop.f32.mrb[80].mxu1 }
 0x23f   :  { %v2621_v4 = vadd.f32 %v1317_v17, %v3278_v37  ;;  %v1319_v56 = vpop.f32.mrb[49].mxu0  ;;  %v2470_v22 = vpop.f32.mrb[81].mxu1 }
 0x240   :  { %v2622_v57 = vadd.f32 %v1319_v56, %v3286_v43  ;;  %v2471_v59 = vadd.f32 %v2470_v22, %v2469_v53  ;;  %v1321_v16 = vpop.f32.mrb[50].mxu0  ;;  %v2472_v19 = vpop.f32.mrb[82].mxu1  ;;  %1877 = vmatprep.mubr.bf16.mxu0 %v1608_v49  ;;  %v1609_v60 = vpack.c.bf16 %v1573_v50, %v1570_v48 }
 0x241   :  { %v2623_v62 = vadd.f32 %v1321_v16, %v3278_v37  ;;  %v1323_v63 = vpop.f32.mrb[51].mxu0  ;;  %v2473_v2 = vpop.f32.mrb[83].mxu1  ;;  %1878 = vmatmul.mubr.bf16.gmra.mrb[76].mxu0 %v1607_v47  ;;  %v1574_v26 = vmax.f32 %v2621_v4, 0.0  ;;  %v1439_v4 = vadd.f32 %v3265_v9, %v3282_v42 }
 0x242   :  { %v1520_v5 = vadd.f32 %v2471_v59, %v1423_v23  ;;  %v2624_v58 = vadd.f32 %v1323_v63, %v3286_v43  ;;  %v2474_v7 = vadd.f32 %v2473_v2, %v2472_v19  ;;  %2594 = vmatmul.mubr.bf16.gmra.mrb[100].mxu1 %v1609_v60  ;;  %v1575_v10 = vmax.f32 %v2622_v57, 0.0 }
 0x243   :  { %v1577_v6 = vmax.f32 %v2623_v62, 0.0  ;;  %v1442_v62 = vadd.f32 %v3267_v54, %v3282_v42 }
 0x244   :  { %v1578_v20 = vmax.f32 %v2624_v58, 0.0  ;;  %v1523_v14 = vadd.f32 %v2474_v7, %v1426_v3  ;;  %v1576_v21 = vmax.f32 %v1520_v5, 0.0 }
 0x245   :  { %v1610_v15 = vpack.c.bf16 %v1577_v6, %v1574_v26 }
 0x246   :  { %v1611_v18 = vpack.c.bf16 %v1578_v20, %v1575_v10  ;;  %v1579_v24 = vmax.f32 %v1523_v14, 0.0  ;;  %v1327_v25 = vpop.f32.mrb[52].mxu0  ;;  %v2475_v61 = vpop.f32.mrb[84].mxu1 }
 0x247   :  { %v2625_v27 = vadd.f32 %v1327_v25, %v3278_v37  ;;  %v1329_v28 = vpop.f32.mrb[53].mxu0  ;;  %v2476_v29 = vpop.f32.mrb[85].mxu1  ;;  %v1447_v25 = vadd.f32 %v3269_v8, %v3282_v42 }
 0x248   :  { %v2626_v30 = vadd.f32 %v1329_v28, %v3286_v43  ;;  %v2477_v34 = vadd.f32 %v2476_v29, %v2475_v61  ;;  %v1331_v39 = vpop.f32.mrb[54].mxu0  ;;  %v2478_v40 = vpop.f32.mrb[86].mxu1  ;;  %1885 = vmatprep.mubr.bf16.mxu0 %v1611_v18  ;;  %v1612_v32 = vpack.c.bf16 %v1579_v24, %v1576_v21 }
 0x249   :  { %v2627_v35 = vadd.f32 %v1331_v39, %v3278_v37  ;;  %v1333_v11 = vpop.f32.mrb[55].mxu0  ;;  %v2479_v52 = vpop.f32.mrb[87].mxu1  ;;  %1886 = vmatmul.mubr.bf16.gmra.mrb[80].mxu0 %v1610_v15  ;;  %v1580_v38 = vmax.f32 %v2625_v27, 0.0 }
 0x24a   :  { %v1528_v36 = vadd.f32 %v2477_v34, %v1431_v13  ;;  %v2628_v1 = vadd.f32 %v1333_v11, %v3286_v43  ;;  %v2480_v12 = vadd.f32 %v2479_v52, %v2478_v40  ;;  %2597 = vmatprep.mubr.bf16.mxu1 %v1612_v32  ;;  %v1581_v0 = vmax.f32 %v2626_v30, 0.0 }
 0x24b   :  { %v1583_v51 = vmax.f32 %v2627_v35, 0.0  ;;  %v1450_v40 = vadd.f32 %v3274_v31, %v3282_v42 }
 0x24c   :  { %v1584_v55 = vmax.f32 %v2628_v1, 0.0  ;;  %v1531_v44 = vadd.f32 %v2480_v12, %v1434_v33  ;;  %v1582_v46 = vmax.f32 %v1528_v36, 0.0 }
 0x24d   :  { %v1613_v45 = vpack.c.bf16 %v1583_v51, %v1580_v38 }
 0x24e   :  { %v1614_v47 = vpack.c.bf16 %v1584_v55, %v1581_v0  ;;  %v1585_v48 = vmax.f32 %v1531_v44, 0.0  ;;  %v1337_v49 = vpop.f32.mrb[56].mxu0  ;;  %v2481_v50 = vpop.f32.mrb[88].mxu1 }
 0x24f   :  { %v2629_v17 = vadd.f32 %v1337_v49, %v3278_v37  ;;  %v1339_v53 = vpop.f32.mrb[57].mxu0  ;;  %v2482_v41 = vpop.f32.mrb[89].mxu1 }
 0x250   :  { %v2630_v56 = vadd.f32 %v1339_v53, %v3286_v43  ;;  %v2483_v22 = vadd.f32 %v2482_v41, %v2481_v50  ;;  %v1341_v23 = vpop.f32.mrb[58].mxu0  ;;  %v2484_v57 = vpop.f32.mrb[90].mxu1  ;;  %1893 = vmatprep.mubr.bf16.mxu0 %v1614_v47  ;;  %v1615_v59 = vpack.c.bf16 %v1585_v48, %v1582_v46  ;;  %v3353_v46 = vld [vmem:[%s3392_s6] ss:$0 sm:$0xff]  ;;  %s2946_s6 = smov [#allocation7]  }
 0x251   :  { %v2631_v16 = vadd.f32 %v1341_v23, %v3278_v37  ;;  %v1343_v19 = vpop.f32.mrb[59].mxu0  ;;  %v2485_v60 = vpop.f32.mrb[91].mxu1  ;;  %1894 = vmatmul.mubr.bf16.gmra.mrb[84].mxu0 %v1613_v45  ;;  %v1586_v9 = vmax.f32 %v2629_v17, 0.0  ;;  %s2132_s23 = sshll.u32 %s2946_s6, 4  ;;  %s2133_s23 = int_to_ptr.vmem [resolvable:$true] %s2132_s23 }
 0x252   :  { %v1536_v63 = vadd.f32 %v2483_v22, %v1439_v4  ;;  %v2632_v2 = vadd.f32 %v1343_v19, %v3286_v43  ;;  %v2486_v3 = vadd.f32 %v2485_v60, %v2484_v57  ;;  %2598 = vmatmul.mubr.bf16.gmra.mrb[104].mxu1 %v1615_v59  ;;  %v1587_v58 = vmax.f32 %v2630_v56, 0.0  ;;  %s2911_s1 = scalar_lea.vmem %s2133_s23, 1024  ;;  %p2916_p3 = scmp.lt.s32.totalorder %s2133_s23, %s2133_s23 }
 0x253   :  { %v1589_v5 = vmax.f32 %v2631_v16, 0.0  ;;  %p2912_p2 = scmp.ne.s32.totalorder %s2133_s23, %s2911_s1  ;;  %p2917_p4 = scmp.lt.s32.totalorder %s2911_s1, %s2911_s1 }
 0x254   :  { %v1590_v7 = vmax.f32 %v2632_v2, 0.0  ;;  %v1539_v26 = vadd.f32 %v2486_v3, %v1442_v62  ;;  %v1588_v10 = vmax.f32 %v1536_v63, 0.0 }
 0x255   :  { %v1616_v6 = vpack.c.bf16 %v1589_v5, %v1586_v9  ;;  %p2918_p5 = por %p2917_p4, %p2916_p3 }
 0x256   :  { %v1617_v20 = vpack.c.bf16 %v1590_v7, %v1587_v58  ;;  %v1591_v14 = vmax.f32 %v1539_v26, 0.0  ;;  %v1347_v15 = vpop.f32.mrb[60].mxu0  ;;  %v2487_v21 = vpop.f32.mrb[92].mxu1 }
 0x257   :  { %v2633_v18 = vadd.f32 %v1347_v15, %v3278_v37  ;;  %v1349_v24 = vpop.f32.mrb[61].mxu0  ;;  %v2488_v54 = vpop.f32.mrb[93].mxu1  ;;  %p2919_p6 = pnand %p2918_p5, %p2912_p2 }
 0x258   :  { %v2634_v61 = vadd.f32 %v1349_v24, %v3286_v43  ;;  %v2489_v27 = vadd.f32 %v2488_v54, %v2487_v21  ;;  %v1351_v28 = vpop.f32.mrb[62].mxu0  ;;  %v2490_v29 = vpop.f32.mrb[94].mxu1  ;;  %1901 = vmatprep.mubr.bf16.mxu0 %v1617_v20  ;;  %v1618_v13 = vpack.c.bf16 %v1591_v14, %v1588_v10 }
 0x259   :  { %v2635_v30 = vadd.f32 %v1351_v28, %v3278_v37  ;;  %v1353_v34 = vpop.f32.mrb[63].mxu0  ;;  %v2491_v39 = vpop.f32.mrb[95].mxu1  ;;  %1902 = vmatmul.mubr.bf16.gmra.mrb[88].mxu0 %v1616_v6  ;;  %v1592_v8 = vmax.f32 %v2633_v18, 0.0 }
 0x25a   :  { %v1544_v32 = vadd.f32 %v2489_v27, %v1447_v25  ;;  %v2636_v35 = vadd.f32 %v1353_v34, %v3286_v43  ;;  %v2492_v11 = vadd.f32 %v2491_v39, %v2490_v29  ;;  %2601 = vmatprep.mubr.bf16.mxu1 %v1618_v13  ;;  %v1593_v33 = vmax.f32 %v2634_v61, 0.0 }
 0x25b   :  { %v1595_v52 = vmax.f32 %v2635_v30, 0.0 }
 0x25c   :  { %v1596_v36 = vmax.f32 %v2636_v35, 0.0  ;;  %v1547_v1 = vadd.f32 %v2492_v11, %v1450_v40  ;;  %v1594_v38 = vmax.f32 %v1544_v32, 0.0 }
 0x25d   :  { %v1619_v12 = vpack.c.bf16 %v1595_v52, %v1592_v8 }
 0x25e   :  { %v1620_v51 = vpack.c.bf16 %v1596_v36, %v1593_v33  ;;  %v1597_v37 = vmax.f32 %v1547_v1, 0.0 }
 0x260   :  { %1909 = vmatprep.mubr.bf16.mxu0 %v1620_v51  ;;  %v1621_v0 = vpack.c.bf16 %v1597_v37, %v1594_v38 }
 0x261   :  { %1910 = vmatmul.mubr.bf16.gmra.mrb[92].mxu0 %v1619_v12 }
 0x262   :  { %2602 = vmatmul.mubr.bf16.gmra.mrb[108].mxu1 %v1621_v0 }
 0x2fc   :  { %v2509_v55 = vpop.f32.mrb[64].mxu0 }
 0x2fd   :  { %v2510_v31 = vpop.f32.mrb[65].mxu0 }
 0x2fe   :  { %v2511_v42 = vadd.f32 %v2510_v31, %v2509_v55  ;;  %v2512_v44 = vpop.f32.mrb[66].mxu0 }
 0x2ff   :  { %v2513_v43 = vpop.f32.mrb[67].mxu0 }
 0x300   :  { %v2514_v45 = vadd.f32 %v2513_v43, %v2512_v44  ;;  %v1856_v50 = vadd.f32 %v2511_v42, %v3353_v46 }
 0x302   :  { %v1859_v23 = vadd.f32 %v2514_v45, %v3353_v46 }
 0x304   :  { %v2515_v47 = vpop.f32.mrb[68].mxu0 }
 0x305   :  { %v2516_v48 = vpop.f32.mrb[69].mxu0  ;;  %v2591_v49 = vpop.f32.mrb[96].mxu1 }
 0x306   :  { %v2517_v17 = vadd.f32 %v2516_v48, %v2515_v47  ;;  %v2518_v53 = vpop.f32.mrb[70].mxu0  ;;  %v1952_v41 = vpop.f32.mrb[97].mxu1 }
 0x307   :  { %v1953_v4 = vadd.f32 %v1952_v41, %v1856_v50  ;;  %v2519_v56 = vpop.f32.mrb[71].mxu0  ;;  %v2592_v22 = vpop.f32.mrb[98].mxu1 }
 0x308   :  { %v1864_v57 = vadd.f32 %v2517_v17, %v3353_v46  ;;  %v2520_v59 = vadd.f32 %v2519_v56, %v2518_v53  ;;  %v1955_v16 = vpop.f32.mrb[99].mxu1 }
 0x309   :  { %2835 = vtanh.f32 %v1953_v4  ;;  %v1956_v19 = vadd.f32 %v1955_v16, %v1859_v23 }
 0x30a   :  { %v1961_v60 = vadd.f32 %v2591_v49, %v1864_v57  ;;  %v1867_v62 = vadd.f32 %v2520_v59, %v3353_v46 }
 0x30b   :  { %2837 = vtanh.f32 %v1956_v19 }
 0x30c   :  { %2839 = vtanh.f32 %v1961_v60  ;;  %v1964_v63 = vadd.f32 %v2592_v22, %v1867_v62  ;;  %v2521_v2 = vpop.f32.mrb[72].mxu0 }
 0x30d   :  { %v2522_v3 = vpop.f32.mrb[73].mxu0 }
 0x30e   :  { %2841 = vtanh.f32 %v1964_v63  ;;  %v2523_v9 = vadd.f32 %v2522_v3, %v2521_v2  ;;  %v2524_v5 = vpop.f32.mrb[74].mxu0 }
 0x30f   :  { %v2525_v58 = vpop.f32.mrb[75].mxu0 }
 0x310   :  { %v2526_v7 = vadd.f32 %v2525_v58, %v2524_v5  ;;  %v1872_v15 = vadd.f32 %v2523_v9, %v3353_v46 }
 0x312   :  { %v1875_v13 = vadd.f32 %v2526_v7, %v3353_v46 }
 0x313   :  { %v2836_v26 = vpop.eup %2835 }
 0x314   :  { %v2527_v6 = vpop.f32.mrb[76].mxu0  ;;  %v2031_v18 = vmul.f32 2.0, %v2836_v26 }
 0x315   :  { %v2838_v10 = vpop.eup %2837  ;;  %v2528_v20 = vpop.f32.mrb[77].mxu0 }
 0x316   :  { %v2595_v14 = vpop.f32.mrb[100].mxu1  ;;  %v2840_v21 = vpop.eup %2839  ;;  %v2032_v24 = vmul.f32 2.0, %v2838_v10  ;;  %v2529_v54 = vadd.f32 %v2528_v20, %v2527_v6 }
 0x317   :  { %v2530_v25 = vpop.f32.mrb[78].mxu0  ;;  %v1968_v61 = vpop.f32.mrb[101].mxu1  ;;  %v2033_v35 = vmul.f32 2.0, %v2840_v21 }
 0x318   :  { %v1969_v27 = vadd.f32 %v1968_v61, %v1872_v15  ;;  %v2531_v28 = vpop.f32.mrb[79].mxu0  ;;  %v2596_v29 = vpop.f32.mrb[102].mxu1  ;;  %v2321_v34 = vpack.c.bf16 %v2032_v24, %v2031_v18  ;;  %v1880_v39 = vadd.f32 %v2529_v54, %v3353_v46 }
 0x319   :  { %v2842_v30 = vpop.eup %2841  ;;  %v2532_v40 = vadd.f32 %v2531_v28, %v2530_v25  ;;  %v1971_v32 = vpop.f32.mrb[103].mxu1 }
 0x31a   :  { %v2034_v11 = vmul.f32 2.0, %v2842_v30  ;;  %2843 = vtanh.f32 %v1969_v27  ;;  %v1972_v8 = vadd.f32 %v1971_v32, %v1875_v13  ;;  %2322 = vst [vmem:[#allocation7] sm:$0xff] %v2321_v34   ;;  %v1977_v52 = vadd.f32 %v2595_v14, %v1880_v39 }
 0x31b   :  { %v1883_v33 = vadd.f32 %v2532_v40, %v3353_v46 }
 0x31c   :  { %v2326_v36 = vpack.c.bf16 %v2034_v11, %v2033_v35  ;;  %2845 = vtanh.f32 %v1972_v8  ;;  %v2533_v12 = vpop.f32.mrb[80].mxu0 }
 0x31d   :  { %2847 = vtanh.f32 %v1977_v52  ;;  %v1980_v1 = vadd.f32 %v2596_v29, %v1883_v33  ;;  %v2534_v38 = vpop.f32.mrb[81].mxu0 }
 0x31e   :  { %2358 = vst [vmem:[#allocation7 + $0x8] sm:$0xff] %v2326_v36   ;;  %v2535_v51 = vadd.f32 %v2534_v38, %v2533_v12  ;;  %v2536_v37 = vpop.f32.mrb[82].mxu0 }
 0x31f   :  { %2849 = vtanh.f32 %v1980_v1  ;;  %v2537_v0 = vpop.f32.mrb[83].mxu0 }
 0x320   :  { %v2538_v55 = vadd.f32 %v2537_v0, %v2536_v37  ;;  %v1888_v47 = vadd.f32 %v2535_v51, %v3353_v46 }
 0x322   :  { %v1891_v23 = vadd.f32 %v2538_v55, %v3353_v46 }
 0x324   :  { %v2844_v31 = vpop.eup %2843  ;;  %v2539_v42 = vpop.f32.mrb[84].mxu0 }
 0x325   :  { %v2540_v43 = vpop.f32.mrb[85].mxu0  ;;  %v2599_v45 = vpop.f32.mrb[104].mxu1  ;;  %v2035_v49 = vmul.f32 2.0, %v2844_v31 }
 0x326   :  { %v2846_v44 = vpop.eup %2845  ;;  %v2541_v17 = vadd.f32 %v2540_v43, %v2539_v42  ;;  %v2542_v53 = vpop.f32.mrb[86].mxu0 }
 0x327   :  { %v2848_v48 = vpop.eup %2847  ;;  %v2036_v50 = vmul.f32 2.0, %v2846_v44  ;;  %v1984_v41 = vpop.f32.mrb[105].mxu1 }
 0x328   :  { %v1985_v4 = vadd.f32 %v1984_v41, %v1888_v47  ;;  %v2543_v56 = vpop.f32.mrb[87].mxu0  ;;  %v2600_v22 = vpop.f32.mrb[106].mxu1  ;;  %v1896_v16 = vadd.f32 %v2541_v17, %v3353_v46  ;;  %v2037_v62 = vmul.f32 2.0, %v2848_v48 }
 0x329   :  { %v2850_v57 = vpop.eup %2849  ;;  %v2331_v59 = vpack.c.bf16 %v2036_v50, %v2035_v49  ;;  %v2544_v19 = vadd.f32 %v2543_v56, %v2542_v53  ;;  %v1987_v60 = vpop.f32.mrb[107].mxu1 }
 0x32a   :  { %v2038_v63 = vmul.f32 2.0, %v2850_v57  ;;  %2851 = vtanh.f32 %v1985_v4  ;;  %v1988_v2 = vadd.f32 %v1987_v60, %v1891_v23  ;;  %v1993_v3 = vadd.f32 %v2599_v45, %v1896_v16 }
 0x32b   :  { %2359 = vst [vmem:[#allocation7 + $0x10] sm:$0xff] %v2331_v59   ;;  %v1899_v9 = vadd.f32 %v2544_v19, %v3353_v46 }
 0x32c   :  { %v2336_v5 = vpack.c.bf16 %v2038_v63, %v2037_v62  ;;  %2853 = vtanh.f32 %v1988_v2  ;;  %v2545_v7 = vpop.f32.mrb[88].mxu0 }
 0x32d   :  { %2855 = vtanh.f32 %v1993_v3  ;;  %v1996_v58 = vadd.f32 %v2600_v22, %v1899_v9  ;;  %v2546_v26 = vpop.f32.mrb[89].mxu0 }
 0x32e   :  { %2360 = vst [vmem:[#allocation7 + $0x18] sm:$0xff] %v2336_v5   ;;  %v2547_v6 = vadd.f32 %v2546_v26, %v2545_v7  ;;  %v2548_v10 = vpop.f32.mrb[90].mxu0 }
 0x32f   :  { %2857 = vtanh.f32 %v1996_v58  ;;  %v2549_v20 = vpop.f32.mrb[91].mxu0 }
 0x330   :  { %v2550_v14 = vadd.f32 %v2549_v20, %v2548_v10  ;;  %v1904_v25 = vadd.f32 %v2547_v6, %v3353_v46 }
 0x332   :  { %v1907_v32 = vadd.f32 %v2550_v14, %v3353_v46 }
 0x334   :  { %v2852_v15 = vpop.eup %2851  ;;  %v2551_v21 = vpop.f32.mrb[92].mxu0 }
 0x335   :  { %v2552_v24 = vpop.f32.mrb[93].mxu0  ;;  %v2603_v54 = vpop.f32.mrb[108].mxu1  ;;  %v2039_v27 = vmul.f32 2.0, %v2852_v15 }
 0x336   :  { %v2854_v18 = vpop.eup %2853  ;;  %v2553_v29 = vadd.f32 %v2552_v24, %v2551_v21  ;;  %v2554_v13 = vpop.f32.mrb[94].mxu0 }
 0x337   :  { %v2856_v61 = vpop.eup %2855  ;;  %v2040_v28 = vmul.f32 2.0, %v2854_v18  ;;  %v2000_v30 = vpop.f32.mrb[109].mxu1 }
 0x338   :  { %v2001_v34 = vadd.f32 %v2000_v30, %v1904_v25  ;;  %v2555_v39 = vpop.f32.mrb[95].mxu0  ;;  %v2604_v40 = vpop.f32.mrb[110].mxu1  ;;  %v1912_v8 = vadd.f32 %v2553_v29, %v3353_v46  ;;  %v2041_v36 = vmul.f32 2.0, %v2856_v61 }
 0x339   :  { %v2858_v35 = vpop.eup %2857  ;;  %v2341_v11 = vpack.c.bf16 %v2040_v28, %v2039_v27  ;;  %v2556_v52 = vadd.f32 %v2555_v39, %v2554_v13  ;;  %v2003_v33 = vpop.f32.mrb[111].mxu1 }
 0x33a   :  { %v2042_v1 = vmul.f32 2.0, %v2858_v35  ;;  %2859 = vtanh.f32 %v2001_v34  ;;  %v2004_v12 = vadd.f32 %v2003_v33, %v1907_v32  ;;  %v2009_v38 = vadd.f32 %v2603_v54, %v1912_v8 }
 0x33b   :  { %2361 = vst [vmem:[#allocation7 + $0x20] sm:$0xff] %v2341_v11   ;;  %v1915_v51 = vadd.f32 %v2556_v52, %v3353_v46 }
 0x33c   :  { %v2346_v37 = vpack.c.bf16 %v2042_v1, %v2041_v36  ;;  %2861 = vtanh.f32 %v2004_v12 }
 0x33d   :  { %2863 = vtanh.f32 %v2009_v38  ;;  %v2012_v0 = vadd.f32 %v2604_v40, %v1915_v51 }
 0x33e   :  { %2362 = vst [vmem:[#allocation7 + $0x28] sm:$0xff] %v2346_v37  }
 0x33f   :  { %2865 = vtanh.f32 %v2012_v0 }
 0x344   :  { %v2860_v55 = vpop.eup %2859 }
 0x345   :  { %v2043_v44 = vmul.f32 2.0, %v2860_v55 }
 0x346   :  { %v2862_v31 = vpop.eup %2861 }
 0x347   :  { %v2864_v42 = vpop.eup %2863  ;;  %v2044_v43 = vmul.f32 2.0, %v2862_v31 }
 0x348   :  { %v2045_v48 = vmul.f32 2.0, %v2864_v42 }
 0x349   :  { %v2866_v45 = vpop.eup %2865  ;;  %v2351_v47 = vpack.c.bf16 %v2044_v43, %v2043_v44 }
 0x34a   :  { %v2046_v49 = vmul.f32 2.0, %v2866_v45 }
 0x34b   :  { %2363 = vst [vmem:[#allocation7 + $0x30] sm:$0xff] %v2351_v47  }
 0x34c   :  { %v2356_v50 = vpack.c.bf16 %v2046_v49, %v2045_v48 }
 0x34e   :  { %2364 = vst [vmem:[#allocation7 + $0x38] sm:$0xff] %v2356_v50  }
 0x34f   :  { %2922 = shalt.err (!%p2919_p6)
}
 0x350   :  { %s2923_s27 = scalar_lea.hbm %s3393_s7, 1024 }
 0x351   :  { %p2924_p7 = scmp.ne.s32.totalorder %s3393_s7, %s2923_s27  ;;  %p2927_p8 = scmp.lt.u32.totalorder %s2923_s27, %s3393_s7 }
 0x353   :  { %p2929_p9 = pnand %p2927_p8, %p2924_p7 }
 0x355   :  { %2932 = shalt.err (!%p2929_p9)
}
 0x356   :  { %2138 = dma.vmem_to_hbm [thread:$0]  %s2133_s23, 1024, %s3393_s7, [#allocation4], %s2943_s3, %s2943_s3, %s2944_s25  }
 0x357   :  { %2937 = dma.done.wait [#allocation4], 1024  }
 0x358   :  { %2938 = vsyncadd [#allocation4], 4294966272 }
 0x359   :  { %2142 = vsyncpa [#allocation3], 1 }
 0x35a   :  { %2143 = vsyncpa [#allocation6], 1 }
 0x35b   :  { %2144 = vsyncpa [#allocation4], 1 }

</bundles_post_ra>
